<compile_context>
chip_gen: v7x
topology: tpu7x:2x2x1
jax: 0.10.0
libtpu: 0.0.40
codegen_flags: <defaults>
</compile_context>

<pallas_src>
import functools

import jax
import jax.numpy as jnp
from jax import lax
from jax.experimental import pallas as pl
from jax.experimental.pallas import tpu as pltpu

_EPS = 1e-5
_NEG_INF = -1e9


# -----------------------------------------------------------------------------
# Fused Pallas kernel: one grid step = one padded scene, both GAT layers inside.
# -----------------------------------------------------------------------------
def _fused_gat_kernel(lens_ref, x_ref, *refs, meta, n_pad, K):
    n_layers = len(meta)
    param_refs = refs[:3 * n_layers]
    o_ref = refs[3 * n_layers]

    sc = pl.program_id(0)
    n_valid = lens_ref[sc]                                   # true #pedestrians this scene
    inv_n = 1.0 / n_valid.astype(jnp.float32)

    # Hoisted once per scene: row-validity mask (pedestrian axis) for the instance norm
    # and additive column mask for the softmax (adj itself is all-ones -> no-op mask).
    row_ids = lax.broadcasted_iota(jnp.int32, (n_pad, 1), 0)
    row_mask = (row_ids < n_valid).astype(jnp.float32)[None]        # (1, n_pad, 1)
    col_ids = lax.broadcasted_iota(jnp.int32, (1, n_pad), 1)
    col_bias = jnp.where(col_ids < n_valid, 0.0, _NEG_INF)[None]    # (1, 1, n_pad)

    x = x_ref[0].astype(jnp.float32)                                # (K, n_pad, C)

    for li, (n_head, f_out, apply_elu) in enumerate(meta):
        w_ref, a_ref, b_ref = param_refs[3 * li:3 * li + 3]
        w = w_ref[...].astype(jnp.float32)          # (f_in, n_head*f_out)   head-concat packed
        a_both = a_ref[...].astype(jnp.float32)     # (n_head*f_out, 2*n_head)  [src | dst] blkdiag
        bias_row = b_ref[...].astype(jnp.float32)   # (1, n_head*f_out)      bias tiled per head

        f_in = w.shape[0]
        hf = n_head * f_out

        # ---- masked instance norm over pedestrians (mask = valid rows, adj all-ones) ----
        xm = x * row_mask
        mean = jnp.sum(xm, axis=1, keepdims=True) * inv_n                       # (K,1,C)
        var = jnp.sum(((x - mean) * row_mask) ** 2, axis=1, keepdims=True) * inv_n
        xn = (x - mean) * lax.rsqrt(var + _EPS)                                 # (K,n_pad,C)

        # ---- single projection matmul for ALL heads, M = K*n_pad (tile-aligned reshape) ----
        xf = xn.reshape(K * n_pad, f_in)
        hcat_f = jnp.dot(xf, w, preferred_element_type=jnp.float32)             # (K*n, HF)
        # per-head src/dst attention scores via ONE matmul against the packed block-diag
        s_all = jnp.dot(hcat_f, a_both, preferred_element_type=jnp.float32)     # (K*n, 2H)
        s_src_f = s_all[:, :n_head]
        s_dst_f = s_all[:, n_head:]

        hcat = hcat_f.reshape(K, n_pad, hf)
        s_src = s_src_f.reshape(K, n_pad, n_head)
        s_dst_t = jnp.transpose(s_dst_f.reshape(K, n_pad, n_head), (0, 2, 1))   # (K,H,n)

        head_outs = []
        for h in range(n_head):                       # heads: only the (n,n) attention apply
            logits = s_src[:, :, h:h + 1] + s_dst_t[:, h:h + 1, :]              # (K,n,n)
            logits = jnp.where(logits >= 0.0, logits, 0.2 * logits)             # LeakyReLU
            logits = logits + col_bias                 # mask padded columns only (adj == 1)
            logits = logits - jnp.max(logits, axis=-1, keepdims=True)
            e = jnp.exp(logits)
            p = e * pl.reciprocal(jnp.sum(e, axis=-1, keepdims=True), approx=True)
            # attn_dropout: eval mode -> identity
            h_h = hcat[:, :, h * f_out:(h + 1) * f_out]                         # (K,n,F)
            out_h = lax.dot_general(p, h_h, (((2,), (1,)), ((0,), (0,))),
                                    preferred_element_type=jnp.float32)         # (K,n,F)
            head_outs.append(out_h)

        y = head_outs[0] if n_head == 1 else jnp.concatenate(head_outs, axis=-1)
        y = y + bias_row[None]                                                  # (K,n,HF)
        if apply_elu:
            y = jnp.where(y > 0.0, y, jnp.exp(jnp.minimum(y, 0.0)) - 1.0)       # F.elu
        x = y

    o_ref[0] = x.astype(o_ref.dtype)


# -----------------------------------------------------------------------------
# Wrapper: pack parameters, build specs, single pallas_call over all scenes.
# -----------------------------------------------------------------------------
def _pack_block_diag(a, n_head, f_out):
    """a: (n_head, f_out, 1) -> (n_head*f_out, n_head), block-diagonal."""
    a_flat = a[:, :, 0]                                       # (H, F)
    eye = jnp.eye(n_head, dtype=a.dtype)                      # (H, H)
    return (a_flat[:, :, None] * eye[:, None, :]).reshape(n_head * f_out, n_head)


def fused_gat_pallas(x_packed, lens, layers):
    """x_packed: (S, K, n_pad, D), lens: (S,) int32 true pedestrian counts."""
    S, K, n_pad, D = x_packed.shape
    n_layer = len(layers)

    meta = []
    flat_params = []
    in_specs = [pl.BlockSpec((1, K, n_pad, D), lambda s, lens_ref: (s, 0, 0, 0))]
    for li, lp in enumerate(layers):
        nh, f_in_l, f_out = lp["w"].shape
        hf = nh * f_out
        w_all = jnp.transpose(lp["w"], (1, 0, 2)).reshape(f_in_l, hf)   # head-concat layout
        a_both = jnp.concatenate(
            [_pack_block_diag(lp["a_src"], nh, f_out),
             _pack_block_diag(lp["a_dst"], nh, f_out)], axis=1)         # (hf, 2*nh)
        bias_row = jnp.tile(lp["bias"], nh).reshape(1, hf)
        flat_params += [w_all, a_both, bias_row]
        for p in (w_all, a_both, bias_row):
            in_specs.append(pl.BlockSpec(p.shape, lambda s, lens_ref: (0, 0)))
        meta.append((nh, f_out, li + 1 != n_layer))
    out_dim = meta[-1][0] * meta[-1][1]

    # Advisory cost estimate so XLA can schedule around this (tiny) custom call.
    flops = 0
    trans = 0
    f_prev = D
    for (nh, f_out, apply_elu) in meta:
        hf = nh * f_out
        flops += 2 * S * K * n_pad * f_prev * hf            # projection
        flops += 2 * S * K * n_pad * hf * 2 * nh            # src/dst scores (one fused matmul)
        flops += 2 * S * K * nh * n_pad * n_pad * f_out     # attention apply
        trans += S * K * nh * n_pad * n_pad                 # softmax exps
        trans += S * K * n_pad * hf if apply_elu else 0     # elu exps
        f_prev = hf
    bytes_accessed = 4 * (x_packed.size + sum(int(p.size) for p in flat_params)
                          + S * K * n_pad * out_dim)

    kernel = functools.partial(_fused_gat_kernel, meta=tuple(meta), n_pad=n_pad, K=K)
    return pl.pallas_call(
        kernel,
        out_shape=jax.ShapeDtypeStruct((S, K, n_pad, out_dim), jnp.float32),
        grid_spec=pltpu.PrefetchScalarGridSpec(
            num_scalar_prefetch=1,
            grid=(S,),
            in_specs=in_specs,
            out_specs=pl.BlockSpec((1, K, n_pad, out_dim),
                                   lambda s, lens_ref: (s, 0, 0, 0)),
        ),
        compiler_params=pltpu.CompilerParams(
            dimension_semantics=("parallel",)),      # scene axis shards across TCs on v7x
        cost_estimate=pl.CostEstimate(flops=int(flops), transcendentals=int(trans),
                                      bytes_accessed=int(bytes_accessed)),
    )(lens, x_packed, *flat_params)


# -----------------------------------------------------------------------------
# Parameters (deterministic, synthetic) -- mirrors BatchMultiHeadGraphAttention init
# -----------------------------------------------------------------------------
def _xavier_uniform(key, shape, gain):
    receptive = 1
    for d in shape[2:]:
        receptive *= d
    fan_in = shape[1] * receptive
    fan_out = shape[0] * receptive
    bound = gain * (6.0 / (fan_in + fan_out)) ** 0.5
    return jax.random.uniform(key, shape, jnp.float32, -bound, bound)


def init_gat_params(key, n_units, n_heads):
    layers = []
    n_layer = len(n_units) - 1
    for i in range(n_layer):
        f_in = n_units[i] * n_heads[i - 1] if i else n_units[i]
        f_out = n_units[i + 1]
        nh = n_heads[i]
        key, kw, ks, kd = jax.random.split(key, 4)
        layers.append(dict(
            w=_xavier_uniform(kw, (nh, f_in, f_out), 1.414),
            a_src=_xavier_uniform(ks, (nh, f_out, 1), 1.414),
            a_dst=_xavier_uniform(kd, (nh, f_out, 1), 1.414),
            bias=jnp.zeros((f_out,), jnp.float32),
        ))
    return layers


# -----------------------------------------------------------------------------
# GATEncoder_pred.forward: pack multi-ped scenes once, single fused kernel call.
# -----------------------------------------------------------------------------
def gat_encoder_pred_forward(pred_lstm_hidden, seq_start_end, batch, K, layers):
    D = pred_lstm_hidden.shape[-1]
    h = pred_lstm_hidden.reshape(batch, K, D).transpose(1, 0, 2)     # (K, batch, D)

    multi = [(i, s, e) for i, (s, e) in enumerate(seq_start_end) if e - s > 1]
    outs = [None] * len(seq_start_end)
    for i, (s, e) in enumerate(seq_start_end):
        if e - s <= 1:
            outs[i] = h[:, s:e, :]                   # singleton scene: passthrough

    if multi:
        max_n = max(e - s for _, s, e in multi)
        n_pad = max(8, -(-max_n // 8) * 8)           # sublane-aligned pedestrian padding
        S = len(multi)
        x_packed = jnp.zeros((S, K, n_pad, D), jnp.float32)
        lens = []
        for idx, (i, s, e) in enumerate(multi):
            x_packed = x_packed.at[idx, :, :e - s, :].set(h[:, s:e, :])
            lens.append(e - s)
        lens = jnp.asarray(lens, jnp.int32)
        y_packed = fused_gat_pallas(x_packed, lens, layers)          # (S, K, n_pad, Dout)
        for idx, (i, s, e) in enumerate(multi):
            outs[i] = y_packed[idx, :, :e - s, :]

    out = jnp.concatenate(outs, axis=1)                              # (K, batch, Dout)
    return out.transpose(1, 0, 2).reshape(batch * K, -1)


# -----------------------------------------------------------------------------
# Pure-JAX reference (correctness check)
# -----------------------------------------------------------------------------
def _gat_layer_ref(x, lp, apply_elu, eps=_EPS):
    mean = jnp.mean(x, axis=1, keepdims=True)
    var = jnp.mean((x - mean) ** 2, axis=1, keepdims=True)
    xn = (x - mean) / jnp.sqrt(var + eps)
    hp = jnp.einsum("knf,hfo->khno", xn, lp["w"])
    s_src = jnp.einsum("khno,hoz->khnz", hp, lp["a_src"])
    s_dst = jnp.einsum("khno,hoz->khnz", hp, lp["a_dst"])
    attn = s_src + jnp.swapaxes(s_dst, -1, -2)
    attn = jnp.where(attn >= 0.0, attn, 0.2 * attn)
    attn = jax.nn.softmax(attn, axis=-1)
    out = jnp.einsum("khnm,khmo->khno", attn, hp) + lp["bias"]
    Kb, H, n, fo = out.shape
    y = jnp.transpose(out, (0, 2, 1, 3)).reshape(Kb, n, H * fo)
    if apply_elu:
        y = jnp.where(y > 0.0, y, jnp.exp(y) - 1.0)
    return y


def gat_encoder_pred_ref(pred_lstm_hidden, seq_start_end, batch, K, layers):
    D = pred_lstm_hidden.shape[-1]
    h = pred_lstm_hidden.reshape(batch, K, D).transpose(1, 0, 2)
    n_layer = len(layers)
    outs = []
    for (start, end) in seq_start_end:
        scene = h[:, start:end, :]
        if end - start > 1:
            x = scene
            for li, lp in enumerate(layers):
                x = _gat_layer_ref(x, lp, apply_elu=(li + 1 != n_layer))
            outs.append(x)
        else:
            outs.append(scene)
    out = jnp.concatenate(outs, axis=1)
    return out.transpose(1, 0, 2).reshape(batch * K, -1)


# -----------------------------------------------------------------------------
if __name__ == "__main__":
    key = jax.random.PRNGKey(0)
    k_param, k_data = jax.random.split(key)

    # Small, module-consistent config:
    batch = 7          # total pedestrians across scenes
    K = 4              # samples per pedestrian
    decoder_h_dim = 32
    n_units = [decoder_h_dim, 16, decoder_h_dim]   # last dim must match h_dim
    n_heads = [4, 1]                               # final layer single head
    seq_start_end = [(0, 3), (3, 4), (4, 7)]       # one singleton scene included

    layers = init_gat_params(k_param, n_units, n_heads)
    pred_lstm_hidden = jax.random.normal(
        k_data, (batch * K, decoder_h_dim), dtype=jnp.float32)

    out = gat_encoder_pred_forward(pred_lstm_hidden, seq_start_end,
                                   batch, K, layers)
    out = jax.block_until_ready(out)

    ref = gat_encoder_pred_ref(pred_lstm_hidden, seq_start_end,
                               batch, K, layers)
    assert out.shape == (batch * K, decoder_h_dim), out.shape
    max_err = float(jnp.max(jnp.abs(out - ref)))
    # Tolerance sized for the in-kernel EUP approximate reciprocal in the softmax.
    assert jnp.allclose(out, ref, atol=2e-2, rtol=2e-2), max_err

    print("KERNEL_OK")
</pallas_src>

<mosaic_0001>
module attributes {stable_mosaic.version = 11 : i64} {
  func.func @_fused_gat_kernel(%arg0: i32, %arg1: memref<2xi32, #tpu.memory_space<smem>>, %arg2: memref<1x4x8x32xf32, #tpu.memory_space<vmem>>, %arg3: memref<32x64xf32, #tpu.memory_space<vmem>>, %arg4: memref<64x8xf32, #tpu.memory_space<vmem>>, %arg5: memref<1x64xf32, #tpu.memory_space<vmem>>, %arg6: memref<64x32xf32, #tpu.memory_space<vmem>>, %arg7: memref<32x2xf32, #tpu.memory_space<vmem>>, %arg8: memref<1x32xf32, #tpu.memory_space<vmem>>, %arg9: memref<1x4x8x32xf32, #tpu.memory_space<vmem>>) attributes {dimension_semantics = [#tpu.dimension_semantics<parallel>], iteration_bounds = array<i64: 2>, scalar_prefetch = 1 : i64, scratch_operands = 0 : i64, tpu.core_type = #tpu.core_type<tc>, window_params = [{transform_indices = @transform_0, window_bounds = array<i64: 1, 4, 8, 32>}, {pipeline_mode = #tpu.pipeline_mode<synchronous>, transform_indices = @transform_1, window_bounds = array<i64: 32, 64>}, {pipeline_mode = #tpu.pipeline_mode<synchronous>, transform_indices = @transform_2, window_bounds = array<i64: 64, 8>}, {pipeline_mode = #tpu.pipeline_mode<synchronous>, transform_indices = @transform_3, window_bounds = array<i64: 1, 64>}, {pipeline_mode = #tpu.pipeline_mode<synchronous>, transform_indices = @transform_4, window_bounds = array<i64: 64, 32>}, {pipeline_mode = #tpu.pipeline_mode<synchronous>, transform_indices = @transform_5, window_bounds = array<i64: 32, 2>}, {pipeline_mode = #tpu.pipeline_mode<synchronous>, transform_indices = @transform_6, window_bounds = array<i64: 1, 32>}, {transform_indices = @transform_7, window_bounds = array<i64: 1, 4, 8, 32>}]} {
    %0 = arith.index_cast %arg0 : i32 to index
    %1 = memref.load %arg1[%0] : memref<2xi32, #tpu.memory_space<smem>>
    %2 = arith.sitofp %1 : i32 to f32
    %cst = arith.constant 1.000000e+00 : f32
    %3 = arith.divf %cst, %2 : f32
    %4 = tpu.iota {dimensions = array<i32: 0>} : vector<8x1xi32>
    %5 = vector.broadcast %1 : i32 to vector<8x1xi32>
    %6 = arith.cmpi slt, %4, %5 : vector<8x1xi32>
    %7 = arith.extui %6 : vector<8x1xi1> to vector<8x1xi32>
    %8 = arith.sitofp %7 : vector<8x1xi32> to vector<8x1xf32>
    %9 = vector.shape_cast %8 : vector<8x1xf32> to vector<1x8x1xf32>
    %10 = tpu.iota {dimensions = array<i32: 1>} : vector<1x8xi32>
    %11 = vector.broadcast %1 : i32 to vector<1x8xi32>
    %12 = arith.cmpi slt, %10, %11 : vector<1x8xi32>
    %cst_0 = arith.constant 0.000000e+00 : f32
    %cst_1 = arith.constant -1.000000e+09 : f32
    %13 = vector.broadcast %cst_0 : f32 to vector<1x8xf32>
    %14 = vector.broadcast %cst_1 : f32 to vector<1x8xf32>
    %15 = arith.select %12, %13, %14 : vector<1x8xi1>, vector<1x8xf32>
    %16 = vector.shape_cast %15 : vector<1x8xf32> to vector<1x1x8xf32>
    %c0 = arith.constant 0 : index
    %c0_2 = arith.constant 0 : index
    %c0_3 = arith.constant 0 : index
    %c0_4 = arith.constant 0 : index
    %17 = vector.load %arg2[%c0, %c0_2, %c0_3, %c0_4] : memref<1x4x8x32xf32, #tpu.memory_space<vmem>>, vector<1x4x8x32xf32>
    %18 = vector.shape_cast %17 : vector<1x4x8x32xf32> to vector<4x8x32xf32>
    %c0_5 = arith.constant 0 : index
    %c0_6 = arith.constant 0 : index
    %19 = vector.load %arg3[%c0_5, %c0_6] : memref<32x64xf32, #tpu.memory_space<vmem>>, vector<32x64xf32>
    %c0_7 = arith.constant 0 : index
    %c0_8 = arith.constant 0 : index
    %20 = vector.load %arg4[%c0_7, %c0_8] : memref<64x8xf32, #tpu.memory_space<vmem>>, vector<64x8xf32>
    %c0_9 = arith.constant 0 : index
    %c0_10 = arith.constant 0 : index
    %21 = vector.load %arg5[%c0_9, %c0_10] : memref<1x64xf32, #tpu.memory_space<vmem>>, vector<1x64xf32>
    %22 = vector.broadcast %9 : vector<1x8x1xf32> to vector<4x8x32xf32>
    %23 = arith.mulf %18, %22 : vector<4x8x32xf32>
    %cst_11 = arith.constant dense<0.000000e+00> : vector<4x32xf32>
    %24 = vector.multi_reduction <add>, %23, %cst_11 [1] : vector<4x8x32xf32> to vector<4x32xf32>
    %25 = vector.shape_cast %24 : vector<4x32xf32> to vector<4x1x32xf32>
    %26 = vector.broadcast %3 : f32 to vector<4x1x32xf32>
    %27 = arith.mulf %25, %26 : vector<4x1x32xf32>
    %28 = vector.broadcast %27 : vector<4x1x32xf32> to vector<4x8x32xf32>
    %29 = arith.subf %18, %28 : vector<4x8x32xf32>
    %30 = vector.broadcast %9 : vector<1x8x1xf32> to vector<4x8x32xf32>
    %31 = arith.mulf %29, %30 : vector<4x8x32xf32>
    %32 = arith.mulf %31, %31 : vector<4x8x32xf32>
    %cst_12 = arith.constant dense<0.000000e+00> : vector<4x32xf32>
    %33 = vector.multi_reduction <add>, %32, %cst_12 [1] : vector<4x8x32xf32> to vector<4x32xf32>
    %34 = vector.shape_cast %33 : vector<4x32xf32> to vector<4x1x32xf32>
    %35 = vector.broadcast %3 : f32 to vector<4x1x32xf32>
    %36 = arith.mulf %34, %35 : vector<4x1x32xf32>
    %37 = vector.broadcast %27 : vector<4x1x32xf32> to vector<4x8x32xf32>
    %38 = arith.subf %18, %37 : vector<4x8x32xf32>
    %cst_13 = arith.constant 9.99999974E-6 : f32
    %39 = vector.broadcast %cst_13 : f32 to vector<4x1x32xf32>
    %40 = arith.addf %36, %39 : vector<4x1x32xf32>
    %41 = math.rsqrt %40 : vector<4x1x32xf32>
    %42 = vector.broadcast %41 : vector<4x1x32xf32> to vector<4x8x32xf32>
    %43 = arith.mulf %38, %42 : vector<4x8x32xf32>
    %44 = vector.shape_cast %43 : vector<4x8x32xf32> to vector<32x32xf32>
    %cst_14 = arith.constant dense<0.000000e+00> : vector<32x64xf32>
    %45 = tpu.matmul %44, %19, %cst_14 {dimension_numbers = #tpu.dot_dimension_numbers<[1], [0], [0], [1], [0, 0, 1, 1], [], []>} : vector<32x32xf32>, vector<32x64xf32>, vector<32x64xf32> -> vector<32x64xf32>
    %cst_15 = arith.constant dense<0.000000e+00> : vector<32x8xf32>
    %46 = tpu.matmul %45, %20, %cst_15 {dimension_numbers = #tpu.dot_dimension_numbers<[1], [0], [0], [1], [0, 0, 1, 1], [], []>} : vector<32x64xf32>, vector<64x8xf32>, vector<32x8xf32> -> vector<32x8xf32>
    %47 = vector.extract_strided_slice %46 {offsets = [0, 0], sizes = [32, 4], strides = [1, 1]} : vector<32x8xf32> to vector<32x4xf32>
    %48 = vector.extract_strided_slice %46 {offsets = [0, 4], sizes = [32, 4], strides = [1, 1]} : vector<32x8xf32> to vector<32x4xf32>
    %49 = vector.shape_cast %45 : vector<32x64xf32> to vector<4x8x64xf32>
    %50 = vector.shape_cast %47 : vector<32x4xf32> to vector<4x8x4xf32>
    %51 = vector.shape_cast %48 : vector<32x4xf32> to vector<4x8x4xf32>
    %52 = tpu.transpose %51, [0, 2, 1] : vector<4x8x4xf32> -> vector<4x4x8xf32>
    %53 = vector.extract_strided_slice %50 {offsets = [0, 0, 0], sizes = [4, 8, 1], strides = [1, 1, 1]} : vector<4x8x4xf32> to vector<4x8x1xf32>
    %54 = vector.extract_strided_slice %52 {offsets = [0, 0, 0], sizes = [4, 1, 8], strides = [1, 1, 1]} : vector<4x4x8xf32> to vector<4x1x8xf32>
    %55 = vector.broadcast %53 : vector<4x8x1xf32> to vector<4x8x8xf32>
    %56 = vector.broadcast %54 : vector<4x1x8xf32> to vector<4x8x8xf32>
    %57 = arith.addf %55, %56 : vector<4x8x8xf32>
    %cst_16 = arith.constant 0.000000e+00 : f32
    %58 = vector.broadcast %cst_16 : f32 to vector<4x8x8xf32>
    %59 = arith.cmpf oge, %57, %58 : vector<4x8x8xf32>
    %cst_17 = arith.constant 2.000000e-01 : f32
    %60 = vector.broadcast %cst_17 : f32 to vector<4x8x8xf32>
    %61 = arith.mulf %60, %57 : vector<4x8x8xf32>
    %62 = arith.select %59, %57, %61 : vector<4x8x8xi1>, vector<4x8x8xf32>
    %63 = vector.broadcast %16 : vector<1x1x8xf32> to vector<4x8x8xf32>
    %64 = arith.addf %62, %63 : vector<4x8x8xf32>
    %cst_18 = arith.constant dense<0xFF800000> : vector<4x8xf32>
    %65 = vector.multi_reduction <maximumf>, %64, %cst_18 [2] : vector<4x8x8xf32> to vector<4x8xf32>
    %66 = vector.shape_cast %65 : vector<4x8xf32> to vector<4x8x1xf32>
    %67 = vector.broadcast %66 : vector<4x8x1xf32> to vector<4x8x8xf32>
    %68 = arith.subf %64, %67 : vector<4x8x8xf32>
    %69 = math.exp %68 : vector<4x8x8xf32>
    %cst_19 = arith.constant dense<0.000000e+00> : vector<4x8xf32>
    %70 = vector.multi_reduction <add>, %69, %cst_19 [2] : vector<4x8x8xf32> to vector<4x8xf32>
    %71 = vector.shape_cast %70 : vector<4x8xf32> to vector<4x8x1xf32>
    %72 = tpu.reciprocal %71 {approx = true} : vector<4x8x1xf32> -> vector<4x8x1xf32>
    %73 = vector.broadcast %72 : vector<4x8x1xf32> to vector<4x8x8xf32>
    %74 = arith.mulf %69, %73 : vector<4x8x8xf32>
    %75 = vector.extract_strided_slice %49 {offsets = [0, 0, 0], sizes = [4, 8, 16], strides = [1, 1, 1]} : vector<4x8x64xf32> to vector<4x8x16xf32>
    %cst_20 = arith.constant dense<0.000000e+00> : vector<4x8x16xf32>
    %76 = tpu.matmul %74, %75, %cst_20 {dimension_numbers = #tpu.dot_dimension_numbers<[2], [1], [1], [2], [0, 0, 0, 1, 1, 2], [0], [0]>} : vector<4x8x8xf32>, vector<4x8x16xf32>, vector<4x8x16xf32> -> vector<4x8x16xf32>
    %77 = vector.extract_strided_slice %50 {offsets = [0, 0, 1], sizes = [4, 8, 1], strides = [1, 1, 1]} : vector<4x8x4xf32> to vector<4x8x1xf32>
    %78 = vector.extract_strided_slice %52 {offsets = [0, 1, 0], sizes = [4, 1, 8], strides = [1, 1, 1]} : vector<4x4x8xf32> to vector<4x1x8xf32>
    %79 = vector.broadcast %77 : vector<4x8x1xf32> to vector<4x8x8xf32>
    %80 = vector.broadcast %78 : vector<4x1x8xf32> to vector<4x8x8xf32>
    %81 = arith.addf %79, %80 : vector<4x8x8xf32>
    %cst_21 = arith.constant 0.000000e+00 : f32
    %82 = vector.broadcast %cst_21 : f32 to vector<4x8x8xf32>
    %83 = arith.cmpf oge, %81, %82 : vector<4x8x8xf32>
    %cst_22 = arith.constant 2.000000e-01 : f32
    %84 = vector.broadcast %cst_22 : f32 to vector<4x8x8xf32>
    %85 = arith.mulf %84, %81 : vector<4x8x8xf32>
    %86 = arith.select %83, %81, %85 : vector<4x8x8xi1>, vector<4x8x8xf32>
    %87 = vector.broadcast %16 : vector<1x1x8xf32> to vector<4x8x8xf32>
    %88 = arith.addf %86, %87 : vector<4x8x8xf32>
    %cst_23 = arith.constant dense<0xFF800000> : vector<4x8xf32>
    %89 = vector.multi_reduction <maximumf>, %88, %cst_23 [2] : vector<4x8x8xf32> to vector<4x8xf32>
    %90 = vector.shape_cast %89 : vector<4x8xf32> to vector<4x8x1xf32>
    %91 = vector.broadcast %90 : vector<4x8x1xf32> to vector<4x8x8xf32>
    %92 = arith.subf %88, %91 : vector<4x8x8xf32>
    %93 = math.exp %92 : vector<4x8x8xf32>
    %cst_24 = arith.constant dense<0.000000e+00> : vector<4x8xf32>
    %94 = vector.multi_reduction <add>, %93, %cst_24 [2] : vector<4x8x8xf32> to vector<4x8xf32>
    %95 = vector.shape_cast %94 : vector<4x8xf32> to vector<4x8x1xf32>
    %96 = tpu.reciprocal %95 {approx = true} : vector<4x8x1xf32> -> vector<4x8x1xf32>
    %97 = vector.broadcast %96 : vector<4x8x1xf32> to vector<4x8x8xf32>
    %98 = arith.mulf %93, %97 : vector<4x8x8xf32>
    %99 = vector.extract_strided_slice %49 {offsets = [0, 0, 16], sizes = [4, 8, 16], strides = [1, 1, 1]} : vector<4x8x64xf32> to vector<4x8x16xf32>
    %cst_25 = arith.constant dense<0.000000e+00> : vector<4x8x16xf32>
    %100 = tpu.matmul %98, %99, %cst_25 {dimension_numbers = #tpu.dot_dimension_numbers<[2], [1], [1], [2], [0, 0, 0, 1, 1, 2], [0], [0]>} : vector<4x8x8xf32>, vector<4x8x16xf32>, vector<4x8x16xf32> -> vector<4x8x16xf32>
    %101 = vector.extract_strided_slice %50 {offsets = [0, 0, 2], sizes = [4, 8, 1], strides = [1, 1, 1]} : vector<4x8x4xf32> to vector<4x8x1xf32>
    %102 = vector.extract_strided_slice %52 {offsets = [0, 2, 0], sizes = [4, 1, 8], strides = [1, 1, 1]} : vector<4x4x8xf32> to vector<4x1x8xf32>
    %103 = vector.broadcast %101 : vector<4x8x1xf32> to vector<4x8x8xf32>
    %104 = vector.broadcast %102 : vector<4x1x8xf32> to vector<4x8x8xf32>
    %105 = arith.addf %103, %104 : vector<4x8x8xf32>
    %cst_26 = arith.constant 0.000000e+00 : f32
    %106 = vector.broadcast %cst_26 : f32 to vector<4x8x8xf32>
    %107 = arith.cmpf oge, %105, %106 : vector<4x8x8xf32>
    %cst_27 = arith.constant 2.000000e-01 : f32
    %108 = vector.broadcast %cst_27 : f32 to vector<4x8x8xf32>
    %109 = arith.mulf %108, %105 : vector<4x8x8xf32>
    %110 = arith.select %107, %105, %109 : vector<4x8x8xi1>, vector<4x8x8xf32>
    %111 = vector.broadcast %16 : vector<1x1x8xf32> to vector<4x8x8xf32>
    %112 = arith.addf %110, %111 : vector<4x8x8xf32>
    %cst_28 = arith.constant dense<0xFF800000> : vector<4x8xf32>
    %113 = vector.multi_reduction <maximumf>, %112, %cst_28 [2] : vector<4x8x8xf32> to vector<4x8xf32>
    %114 = vector.shape_cast %113 : vector<4x8xf32> to vector<4x8x1xf32>
    %115 = vector.broadcast %114 : vector<4x8x1xf32> to vector<4x8x8xf32>
    %116 = arith.subf %112, %115 : vector<4x8x8xf32>
    %117 = math.exp %116 : vector<4x8x8xf32>
    %cst_29 = arith.constant dense<0.000000e+00> : vector<4x8xf32>
    %118 = vector.multi_reduction <add>, %117, %cst_29 [2] : vector<4x8x8xf32> to vector<4x8xf32>
    %119 = vector.shape_cast %118 : vector<4x8xf32> to vector<4x8x1xf32>
    %120 = tpu.reciprocal %119 {approx = true} : vector<4x8x1xf32> -> vector<4x8x1xf32>
    %121 = vector.broadcast %120 : vector<4x8x1xf32> to vector<4x8x8xf32>
    %122 = arith.mulf %117, %121 : vector<4x8x8xf32>
    %123 = vector.extract_strided_slice %49 {offsets = [0, 0, 32], sizes = [4, 8, 16], strides = [1, 1, 1]} : vector<4x8x64xf32> to vector<4x8x16xf32>
    %cst_30 = arith.constant dense<0.000000e+00> : vector<4x8x16xf32>
    %124 = tpu.matmul %122, %123, %cst_30 {dimension_numbers = #tpu.dot_dimension_numbers<[2], [1], [1], [2], [0, 0, 0, 1, 1, 2], [0], [0]>} : vector<4x8x8xf32>, vector<4x8x16xf32>, vector<4x8x16xf32> -> vector<4x8x16xf32>
    %125 = vector.extract_strided_slice %50 {offsets = [0, 0, 3], sizes = [4, 8, 1], strides = [1, 1, 1]} : vector<4x8x4xf32> to vector<4x8x1xf32>
    %126 = vector.extract_strided_slice %52 {offsets = [0, 3, 0], sizes = [4, 1, 8], strides = [1, 1, 1]} : vector<4x4x8xf32> to vector<4x1x8xf32>
    %127 = vector.broadcast %125 : vector<4x8x1xf32> to vector<4x8x8xf32>
    %128 = vector.broadcast %126 : vector<4x1x8xf32> to vector<4x8x8xf32>
    %129 = arith.addf %127, %128 : vector<4x8x8xf32>
    %cst_31 = arith.constant 0.000000e+00 : f32
    %130 = vector.broadcast %cst_31 : f32 to vector<4x8x8xf32>
    %131 = arith.cmpf oge, %129, %130 : vector<4x8x8xf32>
    %cst_32 = arith.constant 2.000000e-01 : f32
    %132 = vector.broadcast %cst_32 : f32 to vector<4x8x8xf32>
    %133 = arith.mulf %132, %129 : vector<4x8x8xf32>
    %134 = arith.select %131, %129, %133 : vector<4x8x8xi1>, vector<4x8x8xf32>
    %135 = vector.broadcast %16 : vector<1x1x8xf32> to vector<4x8x8xf32>
    %136 = arith.addf %134, %135 : vector<4x8x8xf32>
    %cst_33 = arith.constant dense<0xFF800000> : vector<4x8xf32>
    %137 = vector.multi_reduction <maximumf>, %136, %cst_33 [2] : vector<4x8x8xf32> to vector<4x8xf32>
    %138 = vector.shape_cast %137 : vector<4x8xf32> to vector<4x8x1xf32>
    %139 = vector.broadcast %138 : vector<4x8x1xf32> to vector<4x8x8xf32>
    %140 = arith.subf %136, %139 : vector<4x8x8xf32>
    %141 = math.exp %140 : vector<4x8x8xf32>
    %cst_34 = arith.constant dense<0.000000e+00> : vector<4x8xf32>
    %142 = vector.multi_reduction <add>, %141, %cst_34 [2] : vector<4x8x8xf32> to vector<4x8xf32>
    %143 = vector.shape_cast %142 : vector<4x8xf32> to vector<4x8x1xf32>
    %144 = tpu.reciprocal %143 {approx = true} : vector<4x8x1xf32> -> vector<4x8x1xf32>
    %145 = vector.broadcast %144 : vector<4x8x1xf32> to vector<4x8x8xf32>
    %146 = arith.mulf %141, %145 : vector<4x8x8xf32>
    %147 = vector.extract_strided_slice %49 {offsets = [0, 0, 48], sizes = [4, 8, 16], strides = [1, 1, 1]} : vector<4x8x64xf32> to vector<4x8x16xf32>
    %cst_35 = arith.constant dense<0.000000e+00> : vector<4x8x16xf32>
    %148 = tpu.matmul %146, %147, %cst_35 {dimension_numbers = #tpu.dot_dimension_numbers<[2], [1], [1], [2], [0, 0, 0, 1, 1, 2], [0], [0]>} : vector<4x8x8xf32>, vector<4x8x16xf32>, vector<4x8x16xf32> -> vector<4x8x16xf32>
    %149 = tpu.concatenate %76, %100, %124, %148 in 2 : vector<4x8x16xf32>, vector<4x8x16xf32>, vector<4x8x16xf32>, vector<4x8x16xf32> -> vector<4x8x64xf32>
    %150 = vector.shape_cast %21 : vector<1x64xf32> to vector<1x1x64xf32>
    %151 = vector.broadcast %150 : vector<1x1x64xf32> to vector<4x8x64xf32>
    %152 = arith.addf %149, %151 : vector<4x8x64xf32>
    %cst_36 = arith.constant 0.000000e+00 : f32
    %153 = vector.broadcast %cst_36 : f32 to vector<4x8x64xf32>
    %154 = arith.cmpf ogt, %152, %153 : vector<4x8x64xf32>
    %cst_37 = arith.constant 0.000000e+00 : f32
    %155 = vector.broadcast %cst_37 : f32 to vector<4x8x64xf32>
    %156 = arith.minimumf %152, %155 : vector<4x8x64xf32>
    %157 = math.exp %156 : vector<4x8x64xf32>
    %cst_38 = arith.constant 1.000000e+00 : f32
    %158 = vector.broadcast %cst_38 : f32 to vector<4x8x64xf32>
    %159 = arith.subf %157, %158 : vector<4x8x64xf32>
    %160 = arith.select %154, %152, %159 : vector<4x8x64xi1>, vector<4x8x64xf32>
    %c0_39 = arith.constant 0 : index
    %c0_40 = arith.constant 0 : index
    %161 = vector.load %arg6[%c0_39, %c0_40] : memref<64x32xf32, #tpu.memory_space<vmem>>, vector<64x32xf32>
    %c0_41 = arith.constant 0 : index
    %c0_42 = arith.constant 0 : index
    %162 = vector.load %arg7[%c0_41, %c0_42] : memref<32x2xf32, #tpu.memory_space<vmem>>, vector<32x2xf32>
    %c0_43 = arith.constant 0 : index
    %c0_44 = arith.constant 0 : index
    %163 = vector.load %arg8[%c0_43, %c0_44] : memref<1x32xf32, #tpu.memory_space<vmem>>, vector<1x32xf32>
    %164 = vector.broadcast %9 : vector<1x8x1xf32> to vector<4x8x64xf32>
    %165 = arith.mulf %160, %164 : vector<4x8x64xf32>
    %cst_45 = arith.constant dense<0.000000e+00> : vector<4x64xf32>
    %166 = vector.multi_reduction <add>, %165, %cst_45 [1] : vector<4x8x64xf32> to vector<4x64xf32>
    %167 = vector.shape_cast %166 : vector<4x64xf32> to vector<4x1x64xf32>
    %168 = vector.broadcast %3 : f32 to vector<4x1x64xf32>
    %169 = arith.mulf %167, %168 : vector<4x1x64xf32>
    %170 = vector.broadcast %169 : vector<4x1x64xf32> to vector<4x8x64xf32>
    %171 = arith.subf %160, %170 : vector<4x8x64xf32>
    %172 = vector.broadcast %9 : vector<1x8x1xf32> to vector<4x8x64xf32>
    %173 = arith.mulf %171, %172 : vector<4x8x64xf32>
    %174 = arith.mulf %173, %173 : vector<4x8x64xf32>
    %cst_46 = arith.constant dense<0.000000e+00> : vector<4x64xf32>
    %175 = vector.multi_reduction <add>, %174, %cst_46 [1] : vector<4x8x64xf32> to vector<4x64xf32>
    %176 = vector.shape_cast %175 : vector<4x64xf32> to vector<4x1x64xf32>
    %177 = vector.broadcast %3 : f32 to vector<4x1x64xf32>
    %178 = arith.mulf %176, %177 : vector<4x1x64xf32>
    %179 = vector.broadcast %169 : vector<4x1x64xf32> to vector<4x8x64xf32>
    %180 = arith.subf %160, %179 : vector<4x8x64xf32>
    %cst_47 = arith.constant 9.99999974E-6 : f32
    %181 = vector.broadcast %cst_47 : f32 to vector<4x1x64xf32>
    %182 = arith.addf %178, %181 : vector<4x1x64xf32>
    %183 = math.rsqrt %182 : vector<4x1x64xf32>
    %184 = vector.broadcast %183 : vector<4x1x64xf32> to vector<4x8x64xf32>
    %185 = arith.mulf %180, %184 : vector<4x8x64xf32>
    %186 = vector.shape_cast %185 : vector<4x8x64xf32> to vector<32x64xf32>
    %cst_48 = arith.constant dense<0.000000e+00> : vector<32x32xf32>
    %187 = tpu.matmul %186, %161, %cst_48 {dimension_numbers = #tpu.dot_dimension_numbers<[1], [0], [0], [1], [0, 0, 1, 1], [], []>} : vector<32x64xf32>, vector<64x32xf32>, vector<32x32xf32> -> vector<32x32xf32>
    %cst_49 = arith.constant dense<0.000000e+00> : vector<32x2xf32>
    %188 = tpu.matmul %187, %162, %cst_49 {dimension_numbers = #tpu.dot_dimension_numbers<[1], [0], [0], [1], [0, 0, 1, 1], [], []>} : vector<32x32xf32>, vector<32x2xf32>, vector<32x2xf32> -> vector<32x2xf32>
    %189 = vector.extract_strided_slice %188 {offsets = [0, 0], sizes = [32, 1], strides = [1, 1]} : vector<32x2xf32> to vector<32x1xf32>
    %190 = vector.extract_strided_slice %188 {offsets = [0, 1], sizes = [32, 1], strides = [1, 1]} : vector<32x2xf32> to vector<32x1xf32>
    %191 = vector.shape_cast %187 : vector<32x32xf32> to vector<4x8x32xf32>
    %192 = vector.shape_cast %189 : vector<32x1xf32> to vector<4x8x1xf32>
    %193 = vector.shape_cast %190 : vector<32x1xf32> to vector<4x8x1xf32>
    %194 = tpu.transpose %193, [0, 2, 1] : vector<4x8x1xf32> -> vector<4x1x8xf32>
    %195 = vector.broadcast %192 : vector<4x8x1xf32> to vector<4x8x8xf32>
    %196 = vector.broadcast %194 : vector<4x1x8xf32> to vector<4x8x8xf32>
    %197 = arith.addf %195, %196 : vector<4x8x8xf32>
    %cst_50 = arith.constant 0.000000e+00 : f32
    %198 = vector.broadcast %cst_50 : f32 to vector<4x8x8xf32>
    %199 = arith.cmpf oge, %197, %198 : vector<4x8x8xf32>
    %cst_51 = arith.constant 2.000000e-01 : f32
    %200 = vector.broadcast %cst_51 : f32 to vector<4x8x8xf32>
    %201 = arith.mulf %200, %197 : vector<4x8x8xf32>
    %202 = arith.select %199, %197, %201 : vector<4x8x8xi1>, vector<4x8x8xf32>
    %203 = vector.broadcast %16 : vector<1x1x8xf32> to vector<4x8x8xf32>
    %204 = arith.addf %202, %203 : vector<4x8x8xf32>
    %cst_52 = arith.constant dense<0xFF800000> : vector<4x8xf32>
    %205 = vector.multi_reduction <maximumf>, %204, %cst_52 [2] : vector<4x8x8xf32> to vector<4x8xf32>
    %206 = vector.shape_cast %205 : vector<4x8xf32> to vector<4x8x1xf32>
    %207 = vector.broadcast %206 : vector<4x8x1xf32> to vector<4x8x8xf32>
    %208 = arith.subf %204, %207 : vector<4x8x8xf32>
    %209 = math.exp %208 : vector<4x8x8xf32>
    %cst_53 = arith.constant dense<0.000000e+00> : vector<4x8xf32>
    %210 = vector.multi_reduction <add>, %209, %cst_53 [2] : vector<4x8x8xf32> to vector<4x8xf32>
    %211 = vector.shape_cast %210 : vector<4x8xf32> to vector<4x8x1xf32>
    %212 = tpu.reciprocal %211 {approx = true} : vector<4x8x1xf32> -> vector<4x8x1xf32>
    %213 = vector.broadcast %212 : vector<4x8x1xf32> to vector<4x8x8xf32>
    %214 = arith.mulf %209, %213 : vector<4x8x8xf32>
    %cst_54 = arith.constant dense<0.000000e+00> : vector<4x8x32xf32>
    %215 = tpu.matmul %214, %191, %cst_54 {dimension_numbers = #tpu.dot_dimension_numbers<[2], [1], [1], [2], [0, 0, 0, 1, 1, 2], [0], [0]>} : vector<4x8x8xf32>, vector<4x8x32xf32>, vector<4x8x32xf32> -> vector<4x8x32xf32>
    %216 = vector.shape_cast %163 : vector<1x32xf32> to vector<1x1x32xf32>
    %217 = vector.broadcast %216 : vector<1x1x32xf32> to vector<4x8x32xf32>
    %218 = arith.addf %215, %217 : vector<4x8x32xf32>
    %c0_55 = arith.constant 0 : index
    %c0_56 = arith.constant 0 : index
    %c0_57 = arith.constant 0 : index
    %c0_58 = arith.constant 0 : index
    %219 = vector.load %arg9[%c0_55, %c0_56, %c0_57, %c0_58] : memref<1x4x8x32xf32, #tpu.memory_space<vmem>>, vector<1x4x8x32xf32>
    %220 = vector.shape_cast %219 : vector<1x4x8x32xf32> to vector<4x8x32xf32>
    %221 = vector.shape_cast %218 : vector<4x8x32xf32> to vector<1x4x8x32xf32>
    tpu.vector_store %arg9[%c0_55, %c0_56, %c0_57, %c0_58], %221 {strides = array<i32>} : memref<1x4x8x32xf32, #tpu.memory_space<vmem>>, vector<1x4x8x32xf32>,
    return
  }
  func.func @transform_0(%arg0: i32, %arg1: memref<2xi32, #tpu.memory_space<smem>>) -> (i32, i32, i32, i32) {
    %c0_i32 = arith.constant 0 : i32
    %c0_i32_0 = arith.constant 0 : i32
    %c0_i32_1 = arith.constant 0 : i32
    %c0_i32_2 = arith.constant 0 : i32
    return %arg0, %c0_i32, %c0_i32_0, %c0_i32_1 : i32, i32, i32, i32
  }
  func.func @transform_1(%arg0: i32, %arg1: memref<2xi32, #tpu.memory_space<smem>>) -> (i32, i32) {
    %c0_i32 = arith.constant 0 : i32
    %c0_i32_0 = arith.constant 0 : i32
    %c0_i32_1 = arith.constant 0 : i32
    return %c0_i32, %c0_i32_0 : i32, i32
  }
  func.func @transform_2(%arg0: i32, %arg1: memref<2xi32, #tpu.memory_space<smem>>) -> (i32, i32) {
    %c0_i32 = arith.constant 0 : i32
    %c0_i32_0 = arith.constant 0 : i32
    %c0_i32_1 = arith.constant 0 : i32
    return %c0_i32, %c0_i32_0 : i32, i32
  }
  func.func @transform_3(%arg0: i32, %arg1: memref<2xi32, #tpu.memory_space<smem>>) -> (i32, i32) {
    %c0_i32 = arith.constant 0 : i32
    %c0_i32_0 = arith.constant 0 : i32
    %c0_i32_1 = arith.constant 0 : i32
    return %c0_i32, %c0_i32_0 : i32, i32
  }
  func.func @transform_4(%arg0: i32, %arg1: memref<2xi32, #tpu.memory_space<smem>>) -> (i32, i32) {
    %c0_i32 = arith.constant 0 : i32
    %c0_i32_0 = arith.constant 0 : i32
    %c0_i32_1 = arith.constant 0 : i32
    return %c0_i32, %c0_i32_0 : i32, i32
  }
  func.func @transform_5(%arg0: i32, %arg1: memref<2xi32, #tpu.memory_space<smem>>) -> (i32, i32) {
    %c0_i32 = arith.constant 0 : i32
    %c0_i32_0 = arith.constant 0 : i32
    %c0_i32_1 = arith.constant 0 : i32
    return %c0_i32, %c0_i32_0 : i32, i32
  }
  func.func @transform_6(%arg0: i32, %arg1: memref<2xi32, #tpu.memory_space<smem>>) -> (i32, i32) {
    %c0_i32 = arith.constant 0 : i32
    %c0_i32_0 = arith.constant 0 : i32
    %c0_i32_1 = arith.constant 0 : i32
    return %c0_i32, %c0_i32_0 : i32, i32
  }
  func.func @transform_7(%arg0: i32, %arg1: memref<2xi32, #tpu.memory_space<smem>>) -> (i32, i32, i32, i32) {
    %c0_i32 = arith.constant 0 : i32
    %c0_i32_0 = arith.constant 0 : i32
    %c0_i32_1 = arith.constant 0 : i32
    %c0_i32_2 = arith.constant 0 : i32
    return %arg0, %c0_i32, %c0_i32_0, %c0_i32_1 : i32, i32, i32, i32
  }
}

</mosaic_0001>

<bundles_post_ra>
// kernel: tpu_custom_call.1
= control target key start
LH: loop header
LB: loop body
LE: loop exit
PB: predicated region body
PF: predicated region fallthrough
CT: control target
= control target key end

     0   :  { %s4734_s0 = inlined_call_operand.vmem [shape: s32[2], index: 0, kind: input, shape index: {}]   ;;  %s4735_s1 = inlined_call_operand.vmem [shape: f32[2,4,8,32], index: 1, kind: input, shape index: {}]   ;;  %s4736_s2 = inlined_call_operand.vmem [shape: f32[32,64], index: 2, kind: input, shape index: {}]   ;;  %s4737_s3 = inlined_call_operand.vmem [shape: f32[64,8], index: 3, kind: input, shape index: {}]   ;;  %s4738_s4 = inlined_call_operand.vmem [shape: f32[1,64], index: 4, kind: input, shape index: {}]   ;;  %s4739_s5 = inlined_call_operand.vmem [shape: f32[64,32], index: 5, kind: input, shape index: {}]   ;;  %s4740_s6 = inlined_call_operand.vmem [shape: f32[32,2], index: 6, kind: input, shape index: {}]   ;;  %s4741_s7 = inlined_call_operand.vmem [shape: f32[1,32], index: 7, kind: input, shape index: {}]   ;;  %s4742_s8 = inlined_call_operand.hbm [shape: f32[2,4,8,32], index: 8, kind: output, shape index: {}]  }
   0x1   :  { %s13_s29 = sshll.u32 %s4734_s0, 4  ;;  %s14_s29 = int_to_ptr.vmem [resolvable:$true] %s13_s29 }
   0x2   :  { %s3890_s30 = scalar_lea.vmem %s14_s29, 16  ;;  %p3895_p1 = scmp.lt.s32.totalorder %s14_s29, %s14_s29 }
   0x3   :  { %p3891_p0 = scmp.ne.s32.totalorder %s14_s29, %s3890_s30  ;;  %p3896_p2 = scmp.lt.s32.totalorder %s3890_s30, %s3890_s30 }
   0x5   :  { %p3897_p3 = por %p3896_p2, %p3895_p1 }
   0x7   :  { %p3898_p4 = pnand %p3897_p3, %p3891_p0 }
   0x9   :  { %3901 = shalt.err (!%p3898_p4)  }
   0xa   :  { %s3968_s9 = smov [#allocation3]  }
   0xb   :  { %16 = dma.vmem_to_smem %s14_s29, 16, %s3968_s9, [#allocation2] }
   0xc   :  { %3946 = dma.done.wait [#allocation2], 16 }
   0xd   :  { %3947 = vsyncadd [#allocation2], 4294967280 }
   0xe   :  { %18 = sfence }
   0xf   :  { %19 = vsyncpa [#allocation5], 0 }
  0x10   :  { %21 = vsyncpa [#allocation5 + $0x1], 0  ;;  %s4035_s10 = smov 0   ;;  %s4037_s11 = smov 0  }
  0x11   :  { %s4039_s0 = smov 0   ;;  %s4041_s12 = smov 0  }
  0x12 LB: > { %s4056_s13 = sadd.s32 4294967295, %s3966_s12   ;;  %s3351_s14 = sadd.s32 4294967294, %s3966_s12   ;;  %s3966_s12 = sphi %s4041_s12, %s4750_s12   ;;  %s3962_s0 = sphi %s4039_s0, %s4749_s0   ;;  %s3958_s11 = sphi %s4037_s11, %s4748_s11   ;;  %s3954_s10 = sphi %s4035_s10, %s4747_s10  }
  0x13   : > { %s4060_s15 = sadd.s32 1, %s3966_s12   ;;  %s186_s16 = sadd.s32 1, %s3962_s0 }
  0x14   : > { %s183_s17 = ssub.s32 %s3966_s12, %s4060_s15  ;;  %p196_p5 = scmp.ne.s32.totalorder %s3962_s0, %s3958_s11 }
  0x15   : > { %p184_p6 = scmp.eq.s32.totalorder %s183_s17, 0  ;;  %p197_p7 = scmp.eq.s32.totalorder %s4056_s13, 1 }
  0x16   : > { %p202_p8 = scmp.ne.s32.totalorder %s3958_s11, %s3954_s10  ;;  %p203_p9 = scmp.eq.s32.totalorder %s3351_s14, 1 }
  0x17   : > { %s4071_s18 = scalar_select %p184_p6, %s3962_s0, %s186_s16  }
  0x18   : > { %p4073_p10 = por %p197_p7, %p196_p5  ;;  %p4077_p11 = por %p203_p9, %p202_p8 }
  0x19   : > { %p3354_p12 = scmp.ge.s32.totalorder %s3966_s12, 1  ;;  %p247_p13 = scmp.lt.s32.totalorder %s3966_s12, 3 }
  0x1b   : > { %p248_p0 = pnand %p3354_p12, %p247_p13 }
  0x1c   : > { %s4084_s21 = sld [smem:[#allocation3 + %s4056_s13]] (!%p248_p0)  ;;  %v303_v0 = vld [vmem:[%s4736_s2] sm:$0xff] (!%p248_p0)  ;;  %v304_v1 = vld [vmem:[%s4736_s2 + $0x8] sm:$0xff] (!%p248_p0)  ;;  %v289_v2 = vlaneseq (!%p248_p0)  ;;  %v305_v4 = vld [vmem:[%s4736_s2 + $0x10] sm:$0xff] (!%p248_p0)  ;;  %v3969_v22 = vmov (!%p248_p0), 0.0   ;;  %p279_p1 = scmp.lt.s32.totalorder (!%p248_p0), %s4056_s13, 1 }
  0x1d   : > { %251 = sbr.rel (%p248_p0) target bundleno = 2879 (0xb3f), region = 48  ;;  %v3660_v3 = vpack.c.bf16 (!%p248_p0), %v304_v1, %v303_v0  ;;  %v306_v5 = vld [vmem:[%s4736_s2 + $0x18] sm:$0xff] (!%p248_p0)  ;;  %v307_v6 = vld [vmem:[%s4737_s3] sm:$0xff] (!%p248_p0)  ;;  %v308_v8 = vld [vmem:[%s4737_s3 + $0x8] sm:$0xff] (!%p248_p0)  ;;  %vm320_vm2 = vcmask (!%p248_p0), 261120   ;;  %vm507_vm3 = vcmask (!%p248_p0), 523264  }
  0x1e   : > { %v3664_v7 = vpack.c.bf16 (!%p248_p0), %v306_v5, %v305_v4  ;;  %v309_v9 = vld [vmem:[%s4737_s3 + $0x10] sm:$0xff] (!%p248_p0)  ;;  %v310_v10 = vld [vmem:[%s4737_s3 + $0x18] sm:$0xff] (!%p248_p0)  ;;  %v296_v11 = vand.u32 (!%p248_p0), 127, %v289_v2  ;;  %v3668_v12 = vpack.c.bf16 (!%p248_p0), %v308_v8, %v307_v6  ;;  %v311_v14 = vld [vmem:[%s4737_s3 + $0x20] sm:$0xff] (!%p248_p0)  ;;  %v4132_v25 = vshrl.u32 (!%p248_p0), %v289_v2, 7  ;;  %s3971_s26 = smov (!%p248_p0), 96  }
  0x1f   : > { %3661 = vmatprep.subr.bf16.mxu0 (!%p248_p0), %v3660_v3  ;;  %v3672_v13 = vpack.c.bf16 (!%p248_p0), %v310_v10, %v309_v9  ;;  %v312_v15 = vld [vmem:[%s4737_s3 + $0x28] sm:$0xff] (!%p248_p0)  ;;  %v313_v20 = vld [vmem:[%s4737_s3 + $0x30] sm:$0xff] (!%p248_p0)  ;;  %v314_v21 = vld [vmem:[%s4737_s3 + $0x38] sm:$0xff] (!%p248_p0)  ;;  %s3972_s27 = smov (!%p248_p0), 112   ;;  %s3974_s28 = smov (!%p248_p0), 124   ;;  %vm801_vm6 = vcmask (!%p248_p0), 64512  }
  0x20   : > { %3663 = vmatpush3.bf16.msra.mxu0 (!%p248_p0), %v3660_v3  ;;  %3669 = vmatprep.subr.bf16.mxu1 (!%p248_p0), %v3668_v12  ;;  %v3676_v18 = vpack.c.bf16 (!%p248_p0), %v312_v15, %v311_v14  ;;  %v3680_v23 = vpack.c.bf16 (!%p248_p0), %v314_v21, %v313_v20  ;;  %s3980_s30 = smov (!%p248_p0), 16   ;;  %s3981_s9 = smov (!%p248_p0), 32  }
  0x21   : > { %3665 = vmatprep.subr.bf16.mxu0 (!%p248_p0), %v3664_v7  ;;  %3671 = vmatpush3.bf16.msra.mxu1 (!%p248_p0), %v3668_v12  ;;  %s3982_s14 = smov (!%p248_p0), 48  }
  0x22   : > { %s285_s29 = scvt.s32.f32 (!%p248_p0), %s4084_s21  ;;  %v291_v16 = vstv (!%p248_p0), %s4084_s21  ;;  %3673 = vmatprep.subr.bf16.mxu1 (!%p248_p0), %v3672_v13 }
  0x23   : > { %vm4118_vm0 = vcmp.lt.s32.totalorder (!%p248_p0), %v296_v11, %v291_v16  ;;  %vm292_vm1 = vcmp.lt.s32.totalorder (!%p248_p0), %v4132_v25, %v291_v16 }
  0x24   : > { %v286_v19 = vstv %s285_s29  ;;  %3667 = vmatpush3.bf16.msra.mxu0 %v3664_v7  ;;  %s280_s21 = scalar_select %p279_p1, %s4056_s13, 1  ;;  %v4139_v27 = vsel %vm292_vm1, 1.0, %v3969_v22 }
  0x25   : > { %3784 = vrcp.f32 %v286_v19  ;;  %3524 = vmatprep.subr.mxu0 %v3969_v22  ;;  %3675 = vmatpush3.bf16.msra.mxu1 %v3672_v13  ;;  %s3979_s29 = smov 80  }
  0x26   : > { %3677 = vmatprep.subr.bf16.mxu1 %v3676_v18  ;;  %s3406_s17 = sshll.u32 %s280_s21, 5 }
  0x27   : > { %s283_s24 = scalar_lea.vmem %s4735_s1, %s3406_s17 }
  0x28   : > { %v299_v26 = vld [vmem:[%s283_s24] sm:$0xff]  ;;  %v300_v28 = vld [vmem:[%s283_s24 + $0x8] sm:$0xff]  ;;  %v301_v29 = vld [vmem:[%s283_s24 + $0x10] sm:$0xff] }
  0x29   : > { %3679 = vmatpush3.bf16.msra.mxu1 %v3676_v18  ;;  %v302_v30 = vld [vmem:[%s283_s24 + $0x18] sm:$0xff]  ;;  %v316_v31 = vmul.f32 %v4139_v27, %v299_v26  ;;  %v317_v32 = vmul.f32 %v4139_v27, %v300_v28  ;;  %v318_v33 = vmul.f32 %v4139_v27, %v301_v29  ;;  %s3407_s24 = sshll.u32 %s4056_s13, 9 }
  0x2a   : > { %3681 = vmatprep.subr.bf16.mxu1 %v3680_v23  ;;  %v319_v34 = vmul.f32 %v4139_v27, %v302_v30 }
  0x2b   : > { %v321_v35 = vsel %vm320_vm2, %v316_v31, 0.0  ;;  %v328_v36 = vsel %vm320_vm2, %v317_v32, 0.0  ;;  %v335_v37 = vsel %vm320_vm2, %v318_v33, 0.0 }
  0x2c   : > { %v342_v38 = vsel %vm320_vm2, %v319_v34, 0.0  ;;  %v322_v39 = vrot.slane %v321_v35, 4  ;;  %v329_v40 = vrot.slane %v328_v36, 4  ;;  %v336_v41 = vrot.slane %v335_v37, 4 }
  0x2d   : > { %3683 = vmatpush3.bf16.msra.mxu1 %v3680_v23  ;;  %v343_v42 = vrot.slane %v342_v38, 4 }
  0x2e   : > { %3539 = vmatprep.subr.mxu1 %v3969_v22  ;;  %v323_v43 = vadd.f32 %v322_v39, %v321_v35  ;;  %v330_v44 = vadd.f32 %v329_v40, %v328_v36  ;;  %v337_v45 = vadd.f32 %v336_v41, %v335_v37 }
  0x2f   : > { %v3785_v24 = vpop.eup %3784  ;;  %v344_v46 = vadd.f32 %v343_v42, %v342_v38 }
  0x30   : > { %3708 = vpush %v3785_v24  ;;  %v324_v47 = vrot.slane %v323_v43, 2  ;;  %v331_v48 = vrot.slane %v330_v44, 2  ;;  %v338_v49 = vrot.slane %v337_v45, 2 }
  0x31   : > { %v345_v50 = vrot.slane %v344_v46, 2 }
  0x32   : > { %v325_v51 = vadd.f32 %v324_v47, %v323_v43  ;;  %v332_v52 = vadd.f32 %v331_v48, %v330_v44  ;;  %v339_v53 = vadd.f32 %v338_v49, %v337_v45 }
  0x33   : > { %v346_v54 = vadd.f32 %v345_v50, %v344_v46 }
  0x34   : > { %v326_v55 = vrot.slane %v325_v51, 1  ;;  %v333_v56 = vrot.slane %v332_v52, 1  ;;  %v340_v57 = vrot.slane %v339_v53, 1 }
  0x35   : > { %v347_v58 = vrot.slane %v346_v54, 1 }
  0x36   : > { %v327_v59 = vadd.f32 %v326_v55, %v325_v51  ;;  %v334_v60 = vadd.f32 %v333_v56, %v332_v52  ;;  %v341_v61 = vadd.f32 %v340_v57, %v339_v53 }
  0x37   : > { %v348_v62 = vadd.f32 %v347_v58, %v346_v54 }
  0x61   : > { %s3709_s25 = spop %3708 }
  0x62   : > { %v4149_v63 = vstv %s3709_s25 }
  0x63   : > { %v350_v0 = vmul.f32 %v4149_v63, %v327_v59  ;;  %v351_v1 = vmul.f32 %v4149_v63, %v334_v60  ;;  %v352_v2 = vmul.f32 %v4149_v63, %v341_v61  ;;  %v353_v3 = vmul.f32 %v4149_v63, %v348_v62 }
  0x65   : > { %v354_v4 = vsub.f32 %v299_v26, %v350_v0  ;;  %v355_v5 = vsub.f32 %v300_v28, %v351_v1  ;;  %v356_v6 = vsub.f32 %v301_v29, %v352_v2  ;;  %v357_v7 = vsub.f32 %v302_v30, %v353_v3 }
  0x66   : > { %v3970_v2 = vmov 0  }
  0x67   : > { %v358_v8 = vmul.f32 %v4139_v27, %v354_v4  ;;  %v359_v9 = vmul.f32 %v4139_v27, %v355_v5  ;;  %v360_v10 = vmul.f32 %v4139_v27, %v356_v6  ;;  %v361_v11 = vmul.f32 %v4139_v27, %v357_v7  ;;  %3767 = vset.pattern.permute.xlu1 %v3970_v2 }
  0x69   : > { %v362_v12 = vmul.f32 %v358_v8, %v358_v8  ;;  %v363_v13 = vmul.f32 %v359_v9, %v359_v9  ;;  %v364_v14 = vmul.f32 %v360_v10, %v360_v10  ;;  %v365_v15 = vmul.f32 %v361_v11, %v361_v11 }
  0x6a   : > { %v3975_v10 = vmov 2  }
  0x6b   : > { %v366_v16 = vsel %vm320_vm2, %v362_v12, 0.0  ;;  %v373_v18 = vsel %vm320_vm2, %v363_v13, 0.0  ;;  %v380_v19 = vsel %vm320_vm2, %v364_v14, 0.0  ;;  %v387_v20 = vsel %vm320_vm2, %v365_v15, 0.0 }
  0x6c   : > { %v367_v21 = vrot.slane %v366_v16, 4  ;;  %v374_v23 = vrot.slane %v373_v18, 4  ;;  %v381_v24 = vrot.slane %v380_v19, 4  ;;  %v388_v26 = vrot.slane %v387_v20, 4 }
  0x6d   : > { %v3976_v12 = vmov 3  }
  0x6e   : > { %v368_v28 = vadd.f32 %v367_v21, %v366_v16  ;;  %v375_v29 = vadd.f32 %v374_v23, %v373_v18  ;;  %v382_v30 = vadd.f32 %v381_v24, %v380_v19  ;;  %v389_v31 = vadd.f32 %v388_v26, %v387_v20 }
  0x70   : > { %v369_v32 = vrot.slane %v368_v28, 2  ;;  %v376_v33 = vrot.slane %v375_v29, 2  ;;  %v383_v34 = vrot.slane %v382_v30, 2  ;;  %v390_v35 = vrot.slane %v389_v31, 2 }
  0x72   : > { %v370_v36 = vadd.f32 %v369_v32, %v368_v28  ;;  %v377_v37 = vadd.f32 %v376_v33, %v375_v29  ;;  %v384_v38 = vadd.f32 %v383_v34, %v382_v30  ;;  %v391_v39 = vadd.f32 %v390_v35, %v389_v31 }
  0x74   : > { %v371_v40 = vrot.slane %v370_v36, 1  ;;  %v378_v41 = vrot.slane %v377_v37, 1  ;;  %v385_v42 = vrot.slane %v384_v38, 1  ;;  %v392_v43 = vrot.slane %v391_v39, 1 }
  0x76   : > { %v372_v44 = vadd.f32 %v371_v40, %v370_v36  ;;  %v379_v45 = vadd.f32 %v378_v41, %v377_v37  ;;  %v386_v46 = vadd.f32 %v385_v42, %v384_v38  ;;  %v393_v47 = vadd.f32 %v392_v43, %v391_v39 }
  0x77   : > { %v4228_v39 = vsub.s32 0, %v4132_v25  ;;  %v4231_v40 = vsub.s32 1, %v4132_v25  ;;  %v4234_v41 = vsub.s32 2, %v4132_v25  ;;  %v4237_v42 = vsub.s32 3, %v4132_v25 }
  0x78   : > { %v394_v48 = vmul.f32 %v372_v44, %v4149_v63  ;;  %v395_v49 = vmul.f32 %v379_v45, %v4149_v63  ;;  %v396_v50 = vmul.f32 %v386_v46, %v4149_v63  ;;  %v397_v51 = vmul.f32 %v393_v47, %v4149_v63 }
  0x7a   : > { %v398_v52 = vadd.f32 1e-05, %v394_v48  ;;  %v399_v53 = vadd.f32 1e-05, %v395_v49  ;;  %v400_v54 = vadd.f32 1e-05, %v396_v50 }
  0x7b   : > { %v401_v55 = vadd.f32 1e-05, %v397_v51  ;;  %v3977_v51 = vmov -1e+09  }
  0x7c   : > { %3786 = vrsqrt.f32 %v398_v52  ;;  %v4245_v52 = vsel %vm4118_vm0, 0.0, %v3977_v51 }
  0x7d   : > { %3788 = vrsqrt.f32 %v399_v53 }
  0x7e   : > { %3790 = vrsqrt.f32 %v400_v54 }
  0x7f   : > { %3792 = vrsqrt.f32 %v401_v55 }
  0x86   : > { %v3787_v56 = vpop.eup %3786 }
  0x87   : > { %v3789_v57 = vpop.eup %3788  ;;  %v406_v58 = vmul.f32 %v3787_v56, %v354_v4 }
  0x88   : > { %v3791_v59 = vpop.eup %3790  ;;  %v407_v60 = vmul.f32 %v3789_v57, %v355_v5 }
  0x89   : > { %v3793_v61 = vpop.eup %3792  ;;  %3496 = vmatprep.mubr.msk.f32.mxu0 %vm320_vm2, %v406_v58  ;;  %v408_v62 = vmul.f32 %v3791_v59, %v356_v6  ;;  %v3973_v6 = vmov 1  }
  0x8a   : > { %3497 = vmatmul.mubr.msk.f32.vlgmr.msra.gmra.mrb[0].mxu0 %vm320_vm2, %v407_v60  ;;  %v409_v0 = vmul.f32 %v3793_v61, %v357_v7  ;;  %3768 = vset.pattern.permute.xlu0 %v3973_v6 }
  0x8b   : > { %3499 = vmatprep.mubr.msk.f32.mxu0 %vm320_vm2, %v408_v62 }
  0x8e   : > { %3500 = vmatmul.mubr.msk.f32.gmra.mrb[2].mxu0 %vm320_vm2, %v409_v0 }
 0x15d   : > { %v4171_v1 = vpop.f32.mrb[0].mxu0 }
 0x15e   : > { %1710 = vrot.lane.b32.xlu1 %v4171_v1, %s3971_s26  ;;  %1310 = vrot.lane.b32.xlu0 %v4171_v1, %s3972_s27  ;;  %v4177_v3 = vpop.f32.mrb[1].mxu0 }
 0x15f   : > { %3518 = vmatprep.mubr.msk.f32.mxu1 %vm507_vm3, %v4177_v3  ;;  %3525 = vmatpush3.msra.mxu0 %v4177_v3 }
 0x160   : > { %3519 = vmatmul.mubr.msk.f32.vlgmr.msra.gmra.mrb[0].mxu1 %vm507_vm3, %v4171_v1  ;;  %3529 = vmatprep.subr.mxu0 %v3969_v22 }
 0x161   : > { %v4185_v4 = vpop.f32.mrb[2].mxu0 }
 0x162   : > { %1634 = vrot.lane.b32.xlu0 %v4177_v3, %s3971_s26  ;;  %1234 = vrot.lane.b32.xlu1 %v4177_v3, %s3972_s27  ;;  %v4190_v5 = vpop.f32.mrb[3].mxu0 }
 0x163   : > { %3540 = vmatpush3.msra.mxu1 %v4185_v4  ;;  %3521 = vmatprep.mubr.msk.f32.mxu1 %vm507_vm3, %v4190_v5 }
 0x164   : > { %3522 = vmatmul.mubr.msk.f32.gmra.mrb[2].mxu1 %vm507_vm3, %v4185_v4  ;;  %3549 = vmatprep.subr.mxu1 %v3969_v22 }
 0x166   : > { %1462 = vrot.lane.b32.xlu1 %v4185_v4, %s3972_s27 }
 0x16a   : > { %1386 = vrot.lane.b32.xlu1 %v4190_v5, %s3972_s27  ;;  %s4690_s27 = scalar_lea.hbm %s4742_s8, %s3407_s24 }
 0x1d0   : > { %v4203_v13 = vpop.permute.xlu0 %1310  ;;  %v4205_v14 = vpop.permute.xlu1 %1710 }
 0x1d4   : > { %v4207_v15 = vpop.permute.xlu0 %1634  ;;  %v4209_v16 = vpop.permute.xlu1 %1234 }
 0x1d8   : > { %v4211_v19 = vpop.permute.xlu1 %1462 }
 0x1dc   : > { %v4213_v20 = vpop.permute.xlu1 %1386 }
 0x233   : > { %v3520_v7 = vpop.f32.mrb[0].mxu1 }
 0x234   : > { %611 = vrot.lane.b32.xlu0 %v3520_v7, %s3974_s28  ;;  %v586_v8 = vpop.f32.mrb[1].mxu1  ;;  %754 = vperm.xlu1 %3767, %v3520_v7  }
 0x237   : > { %v3523_v9 = vpop.f32.mrb[2].mxu1 }
 0x238   : > { %1143 = vperm.xlu0 %3768, %v3520_v7   ;;  %3769 = vset.pattern.permute.xlu1 %v3975_v10  ;;  %v596_v11 = vpop.f32.mrb[3].mxu1 }
 0x239   : > { %1543 = vperm.xlu1 %3769, %v3520_v7  }
 0x23c   : > { %3770 = vset.pattern.permute.xlu0 %v3976_v12 }
 0x23d   : > { %1943 = vperm.xlu0 %3770, %v3520_v7   ;;  %3772 = vset.pattern.permute.xlu1 %v3973_v6 }
 0x23e   : > { %1139 = vperm.xlu1 %3772, %v586_v8  }
 0x241   : > { %609 = vrot.lane.b32.xlu0 %v586_v8, %s3974_s28 }
 0x242   : > { %615 = vrot.lane.b32.xlu1 %v3523_v9, %s3974_s28  ;;  %3771 = vset.pattern.permute.xlu0 %v3970_v2 }
 0x245   : > { %750 = vperm.xlu0 %3771, %v586_v8  }
 0x246   : > { %1151 = vperm.xlu1 %3772, %v3523_v9  }
 0x249   : > { %3773 = vset.pattern.permute.xlu0 %v3975_v10 }
 0x24a   : > { %1539 = vperm.xlu0 %3773, %v586_v8   ;;  %613 = vrot.lane.b32.xlu1 %v596_v11, %s3974_s28 }
 0x24b   : > { %3778 = vset.pattern.permute.xlu1 %v3970_v2 }
 0x24e   : > { %3774 = vset.pattern.permute.xlu0 %v3976_v12  ;;  %758 = vperm.xlu1 %3778, %v596_v11  }
 0x24f   : > { %1939 = vperm.xlu0 %3774, %v586_v8  }
 0x252   : > { %3779 = vset.pattern.permute.xlu1 %v3973_v6 }
 0x253   : > { %3775 = vset.pattern.permute.xlu0 %v3970_v2  ;;  %1147 = vperm.xlu1 %3779, %v596_v11  }
 0x254   : > { %762 = vperm.xlu0 %3775, %v3523_v9  }
 0x257   : > { %3780 = vset.pattern.permute.xlu1 %v3975_v10 }
 0x258   : > { %3776 = vset.pattern.permute.xlu0 %v3975_v10  ;;  %1547 = vperm.xlu1 %3780, %v596_v11  }
 0x259   : > { %1551 = vperm.xlu0 %3776, %v3523_v9  }
 0x25c   : > { %3781 = vset.pattern.permute.xlu1 %v3976_v12 }
 0x25d   : > { %3777 = vset.pattern.permute.xlu0 %v3976_v12  ;;  %1947 = vperm.xlu1 %3781, %v596_v11  }
 0x25e   : > { %1951 = vperm.xlu0 %3777, %v3523_v9  }
 0x2a6   : > { %v612_v18 = vpop.permute.xlu0 %611 }
 0x2a7   : > { %653 = vxpose.xlu0.b32.start.end [1/1] (short) (narrow) %v612_v18, 8 }
 0x2b3   : > { %v755_v21 = vpop.permute.xlu1 %754 }
 0x2b7   : > { %v1144_v23 = vpop.permute.xlu0 %1143 }
 0x2b8   : > { %v1544_v24 = vpop.permute.xlu1 %1543 }
 0x2bc   : > { %v1944_v26 = vpop.permute.xlu0 %1943 }
 0x2bd   : > { %v4215_v28 = vpop.permute.xlu1 %1139 }
 0x2c0   : > { %v610_v29 = vpop.permute.xlu0 %609 }
 0x2c1   : > { %v616_v30 = vpop.permute.xlu1 %615  ;;  %621 = vxpose.xlu1.b32.start.end [1/1] (short) (narrow) %v610_v29, 8 }
 0x2c2   : > { %717 = vxpose.xlu0.b32.start.end [1/1] (short) (narrow) %v616_v30, 8 }
 0x2c4   : > { %v751_v33 = vpop.permute.xlu0 %750 }
 0x2c5   : > { %v4217_v31 = vpop.permute.xlu1 %1151 }
 0x2c9   : > { %v614_v32 = vpop.permute.xlu1 %613  ;;  %v1540_v34 = vpop.permute.xlu0 %1539 }
 0x2ca   : > { %685 = vxpose.xlu1.b32.start.end [1/1] (short) (narrow) %v614_v32, 8 }
 0x2cd   : > { %v4247_v53 = vpop.permute.xlu1 %758 }
 0x2ce   : > { %v4221_v35 = vpop.permute.xlu0 %1939 }
 0x2d2   : > { %v4252_v60 = vpop.permute.xlu1 %1147 }
 0x2d3   : > { %v4223_v36 = vpop.permute.xlu0 %762 }
 0x2d7   : > { %v4264_v8 = vpop.permute.xlu1 %1547 }
 0x2d8   : > { %v1552_v37 = vpop.permute.xlu0 %1551 }
 0x2dc   : > { %v1948_v11 = vpop.permute.xlu1 %1947 }
 0x2dd   : > { %v4225_v38 = vpop.permute.xlu0 %1951 }
 0x2e8   : > { %3783 = vset.pattern.permute.xlu1 %v3970_v2 }
 0x2eb   : > { %3782 = vset.pattern.permute.xlu0 %v3970_v2 }
 0x327   : > { %v669_v43 = vpop.trf.xlu0 }
 0x328   : > { %v772_v44 = vrot.slane %v669_v43, %v4228_v39  ;;  %v1161_v45 = vrot.slane %v669_v43, %v4231_v40  ;;  %v1561_v46 = vrot.slane %v669_v43, %v4234_v41  ;;  %v1961_v50 = vrot.slane %v669_v43, %v4237_v42 }
 0x32a   : > { %v782_v47 = vadd.f32 %v772_v44, %v755_v21  ;;  %v1171_v48 = vadd.f32 %v1161_v45, %v1144_v23  ;;  %v1571_v49 = vadd.f32 %v1561_v46, %v1544_v24  ;;  %v1971_v55 = vadd.f32 %v1961_v50, %v1944_v26 }
 0x32c   : > { %vm786_vm4 = vcmp.ge.f32.partialorder %v782_v47, 0.0  ;;  %v790_v25 = vmul.f32 0.2, %v782_v47  ;;  %vm1175_vm5 = vcmp.ge.f32.partialorder %v1171_v48, 0.0  ;;  %v1179_v54 = vmul.f32 0.2, %v1171_v48 }
 0x32d   : > { %v1579_v58 = vmul.f32 0.2, %v1571_v49  ;;  %vm1575_vm7 = vcmp.ge.f32.partialorder %v1571_v49, 0.0  ;;  %v1979_v0 = vmul.f32 0.2, %v1971_v55  ;;  %vm1975_vm8 = vcmp.ge.f32.partialorder %v1971_v55, 0.0 }
 0x32e   : > { %v794_v56 = vsel %vm786_vm4, %v782_v47, %v790_v25  ;;  %v1183_v57 = vsel %vm1175_vm5, %v1171_v48, %v1179_v54 }
 0x32f   : > { %v4250_v59 = vadd.f32 %v794_v56, %v4245_v52  ;;  %v4257_v61 = vadd.f32 %v1183_v57, %v4245_v52  ;;  %v1583_v62 = vsel %vm1575_vm7, %v1571_v49, %v1579_v58  ;;  %v1983_v7 = vsel %vm1975_vm8, %v1971_v55, %v1979_v0 }
 0x330   : > { %v4262_v6 = vadd.f32 %v1583_v62, %v4245_v52  ;;  %v4269_v10 = vadd.f32 %v1983_v7, %v4245_v52  ;;  %vm3978_vm8 = vmmov 0  }
 0x331   : > { %v805_v17 = vsel %vm801_vm6, %v4250_v59, -inf  ;;  %v1193_v2 = vsel %vm801_vm6, %v4257_v61, -inf  ;;  %3526 = vmatprep.mubr.msk.f32.mxu0 %vm3978_vm8, %v3969_v22  ;;  %3541 = vmatprep.mubr.msk.f32.mxu1 %vm3978_vm8, %v3969_v22 }
 0x332   : > { %806 = vmax.xlane.f32.xlu0 %v805_v17  ;;  %v1593_v9 = vsel %vm801_vm6, %v4262_v6, -inf  ;;  %v1993_v12 = vsel %vm801_vm6, %v4269_v10, -inf }
 0x336   : > { %1194 = vmax.xlane.f32.xlu0 %v1193_v2 }
 0x33a   : > { %1594 = vmax.xlane.f32.xlu0 %v1593_v9 }
 0x33e   : > { %1994 = vmax.xlane.f32.xlu0 %v1993_v12 }
 0x341   : > { %v637_v18 = vpop.trf.xlu1 }
 0x342   : > { %v768_v21 = vrot.slane %v637_v18, %v4228_v39  ;;  %v1157_v23 = vrot.slane %v637_v18, %v4231_v40  ;;  %v1557_v24 = vrot.slane %v637_v18, %v4234_v41  ;;  %v733_v26 = vpop.trf.xlu0  ;;  %v1957_v44 = vrot.slane %v637_v18, %v4237_v42 }
 0x343   : > { %v1169_v29 = vrot.slane %v733_v26, %v4231_v40  ;;  %v1569_v30 = vrot.slane %v733_v26, %v4234_v41  ;;  %v1969_v45 = vrot.slane %v733_v26, %v4237_v42  ;;  %v780_v47 = vrot.slane %v733_v26, %v4228_v39 }
 0x344   : > { %v781_v32 = vadd.f32 %v768_v21, %v751_v33  ;;  %v1170_v43 = vadd.f32 %v1157_v23, %v4215_v28  ;;  %v1570_v46 = vadd.f32 %v1557_v24, %v1540_v34 }
 0x345   : > { %v1173_v48 = vadd.f32 %v1169_v29, %v4217_v31  ;;  %v1573_v49 = vadd.f32 %v1569_v30, %v1552_v37  ;;  %v1973_v28 = vadd.f32 %v1969_v45, %v4225_v38  ;;  %v1970_v31 = vadd.f32 %v1957_v44, %v4221_v35 }
 0x346   : > { %vm785_vm9 = vcmp.ge.f32.partialorder %v781_v32, 0.0  ;;  %v789_v50 = vmul.f32 0.2, %v781_v32  ;;  %vm1174_vm10 = vcmp.ge.f32.partialorder %v1170_v43, 0.0  ;;  %v1178_v51 = vmul.f32 0.2, %v1170_v43 }
 0x347   : > { %vm1177_vm11 = vcmp.ge.f32.partialorder %v1173_v48, 0.0  ;;  %v1181_v25 = vmul.f32 0.2, %v1173_v48  ;;  %vm1577_vm12 = vcmp.ge.f32.partialorder %v1573_v49, 0.0  ;;  %v1581_v33 = vmul.f32 0.2, %v1573_v49 }
 0x348   : > { %v793_v54 = vsel %vm785_vm9, %v781_v32, %v789_v50  ;;  %v1182_v55 = vsel %vm1174_vm10, %v1170_v43, %v1178_v51  ;;  %v1578_v58 = vmul.f32 0.2, %v1570_v46  ;;  %vm1574_vm13 = vcmp.ge.f32.partialorder %v1570_v46, 0.0 }
 0x349   : > { %v4285_v56 = vadd.f32 %v793_v54, %v4245_v52  ;;  %v1185_v34 = vsel %vm1177_vm11, %v1173_v48, %v1181_v25  ;;  %v1585_v57 = vsel %vm1577_vm12, %v1573_v49, %v1581_v33  ;;  %v784_v62 = vadd.f32 %v780_v47, %v4223_v36 }
 0x34a   : > { %v701_v37 = vpop.trf.xlu1  ;;  %v4289_v17 = vadd.f32 %v1185_v34, %v4245_v52  ;;  %v4298_v7 = vadd.f32 %v1182_v55, %v4245_v52  ;;  %v4301_v35 = vadd.f32 %v1585_v57, %v4245_v52  ;;  %v1582_v18 = vsel %vm1574_vm13, %v1570_v46, %v1578_v58 }
 0x34b   : > { %v1965_v0 = vrot.slane %v701_v37, %v4237_v42  ;;  %v802_v38 = vsel %vm801_vm6, %v4285_v56, -inf  ;;  %v776_v9 = vrot.slane %v701_v37, %v4228_v39  ;;  %vm1977_vm14 = vcmp.ge.f32.partialorder %v1973_v28, 0.0 }
 0x34c   : > { %v1199_v2 = vsel %vm801_vm6, %v4289_v17, -inf  ;;  %803 = vmax.xlane.f32.xlu1 %v802_v38  ;;  %v1981_v36 = vmul.f32 0.2, %v1973_v28  ;;  %vm1974_vm15 = vcmp.ge.f32.partialorder %v1970_v31, 0.0  ;;  %v1978_v42 = vmul.f32 0.2, %v1970_v31 }
 0x34d   : > { %v1972_v12 = vadd.f32 %v1965_v0, %v1948_v11  ;;  %1200 = vmax.xlane.f32.xlu0 %v1199_v2  ;;  %v1165_v21 = vrot.slane %v701_v37, %v4231_v40  ;;  %v1190_v23 = vsel %vm801_vm6, %v4298_v7, -inf  ;;  %v1599_v24 = vsel %vm801_vm6, %v4301_v35, -inf }
 0x34e   : > { %v4310_v26 = vadd.f32 %v1582_v18, %v4245_v52  ;;  %v1985_v29 = vsel %vm1977_vm14, %v1973_v28, %v1981_v36  ;;  %v783_v11 = vadd.f32 %v776_v9, %v4247_v53  ;;  %v1982_v32 = vsel %vm1974_vm15, %v1970_v31, %v1978_v42 }
 0x34f   : > { %v4314_v30 = vadd.f32 %v1985_v29, %v4245_v52  ;;  %v792_v43 = vmul.f32 0.2, %v784_v62  ;;  %vm788_vm0 = vcmp.ge.f32.partialorder %v784_v62, 0.0  ;;  %v1565_v40 = vrot.slane %v701_v37, %v4234_v41 }
 0x350   : > { %1191 = vmax.xlane.f32.xlu1 %v1190_v23  ;;  %v1590_v44 = vsel %vm801_vm6, %v4310_v26, -inf  ;;  %v4320_v45 = vadd.f32 %v1982_v32, %v4245_v52  ;;  %v1172_v46 = vadd.f32 %v1165_v21, %v4252_v60  ;;  %v791_v48 = vmul.f32 0.2, %v783_v11 }
 0x351   : > { %1600 = vmax.xlane.f32.xlu0 %v1599_v24  ;;  %v1999_v53 = vsel %vm801_vm6, %v4314_v30, -inf  ;;  %v796_v47 = vsel %vm788_vm0, %v784_v62, %v792_v43  ;;  %vm787_vm1 = vcmp.ge.f32.partialorder %v783_v11, 0.0  ;;  %v1572_v50 = vadd.f32 %v1565_v40, %v4264_v8 }
 0x352   : > { %v1990_v49 = vsel %vm801_vm6, %v4320_v45, -inf  ;;  %v4328_v41 = vadd.f32 %v796_v47, %v4245_v52  ;;  %v795_v51 = vsel %vm787_vm1, %v783_v11, %v791_v48  ;;  %v1180_v25 = vmul.f32 0.2, %v1172_v46 }
 0x353   : > { %vm1176_vm4 = vcmp.ge.f32.partialorder %v1172_v46, 0.0  ;;  %v4334_v33 = vadd.f32 %v795_v51, %v4245_v52  ;;  %v1580_v54 = vmul.f32 0.2, %v1572_v50  ;;  %vm1576_vm5 = vcmp.ge.f32.partialorder %v1572_v50, 0.0 }
 0x354   : > { %1591 = vmax.xlane.f32.xlu1 %v1590_v44  ;;  %v811_v60 = vsel %vm801_vm6, %v4328_v41, -inf  ;;  %v1184_v28 = vsel %vm1176_vm4, %v1172_v46, %v1180_v25  ;;  %v1980_v37 = vmul.f32 0.2, %v1972_v12  ;;  %vm1976_vm7 = vcmp.ge.f32.partialorder %v1972_v12, 0.0 }
 0x355   : > { %2000 = vmax.xlane.f32.xlu0 %v1999_v53  ;;  %v808_v55 = vsel %vm801_vm6, %v4334_v33, -inf  ;;  %v4339_v34 = vadd.f32 %v1184_v28, %v4245_v52  ;;  %v1584_v8 = vsel %vm1576_vm5, %v1572_v50, %v1580_v54  ;;  %vm2386_vm9 = vcmask 130048  }
 0x356   : > { %v4344_v58 = vadd.f32 %v1584_v8, %v4245_v52  ;;  %v1984_v62 = vsel %vm1976_vm7, %v1972_v12, %v1980_v37  ;;  %vm2395_vm10 = vcmask 392192  }
 0x357   : > { %v1196_v57 = vsel %vm801_vm6, %v4339_v34, -inf  ;;  %v4353_v0 = vadd.f32 %v1984_v62, %v4245_v52 }
 0x358   : > { %1991 = vmax.xlane.f32.xlu1 %v1990_v49  ;;  %v1596_v31 = vsel %vm801_vm6, %v4344_v58, -inf }
 0x359   : > { %v1996_v38 = vsel %vm801_vm6, %v4353_v0, -inf }
 0x35c   : > { %812 = vmax.xlane.f32.xlu1 %v811_v60 }
 0x360   : > { %809 = vmax.xlane.f32.xlu1 %v808_v55 }
 0x364   : > { %1197 = vmax.xlane.f32.xlu1 %v1196_v57 }
 0x368   : > { %1597 = vmax.xlane.f32.xlu1 %v1596_v31 }
 0x36b   : > { %1786 = vrot.lane.b32.xlu0 %v4190_v5, %s3971_s26 }
 0x379   : > { %1862 = vrot.lane.b32.xlu1 %v4185_v4, %s3971_s26 }
 0x39d   : > { %1997 = vmax.xlane.f32.xlu1 %v1996_v38 }
 0x3bf   : > { %v807_v2 = vpop.xlane.xlu0 %806 }
 0x3c0   : > { %v815_v9 = vsub.f32 %v4250_v59, %v807_v2 }
 0x3c2   : > { %v820_v18 = vmul.f32 1.442695, %v815_v9 }
 0x3c3   : > { %v1195_v36 = vpop.xlane.xlu0 %1194 }
 0x3c4   : > { %3794 = vpow2.f32 %v820_v18  ;;  %v1203_v42 = vsub.f32 %v4257_v61, %v1195_v36 }
 0x3c6   : > { %v1208_v21 = vmul.f32 1.442695, %v1203_v42 }
 0x3c7   : > { %v1595_v23 = vpop.xlane.xlu0 %1594 }
 0x3c8   : > { %3796 = vpow2.f32 %v1208_v21  ;;  %v1603_v12 = vsub.f32 %v4262_v6, %v1595_v23 }
 0x3ca   : > { %v1608_v24 = vmul.f32 1.442695, %v1603_v12 }
 0x3cb   : > { %v1995_v29 = vpop.xlane.xlu0 %1994 }
 0x3cc   : > { %3798 = vpow2.f32 %v1608_v24  ;;  %v2003_v11 = vsub.f32 %v4269_v10, %v1995_v29 }
 0x3ce   : > { %v4361_v32 = vpop.eup %3794  ;;  %v2008_v43 = vmul.f32 1.442695, %v2003_v11 }
 0x3cf   : > { %v829_v59 = vsel %vm801_vm6, %v4361_v32, 0.0 }
 0x3d0   : > { %3800 = vpow2.f32 %v2008_v43  ;;  %830 = vadd.xlane.f32.xlu0 %v829_v59 }
 0x3d2   : > { %v4365_v40 = vpop.eup %3796 }
 0x3d3   : > { %v1217_v61 = vsel %vm801_vm6, %v4365_v40, 0.0 }
 0x3d4   : > { %1218 = vadd.xlane.f32.xlu0 %v1217_v61 }
 0x3d6   : > { %v4369_v6 = vpop.eup %3798 }
 0x3d7   : > { %v1617_v44 = vsel %vm801_vm6, %v4369_v6, 0.0 }
 0x3d8   : > { %1618 = vadd.xlane.f32.xlu0 %v1617_v44 }
 0x3d9   : > { %v804_v46 = vpop.xlane.xlu1 %803 }
 0x3da   : > { %v4373_v10 = vpop.eup %3800  ;;  %v814_v53 = vsub.f32 %v4285_v56, %v804_v46  ;;  %v1201_v28 = vpop.xlane.xlu0 %1200 }
 0x3db   : > { %v2017_v47 = vsel %vm801_vm6, %v4373_v10, 0.0  ;;  %v1205_v57 = vsub.f32 %v4289_v17, %v1201_v28 }
 0x3dc   : > { %2018 = vadd.xlane.f32.xlu0 %v2017_v47  ;;  %v818_v48 = vmul.f32 1.442695, %v814_v53 }
 0x3dd   : > { %v1192_v49 = vpop.xlane.xlu1 %1191  ;;  %v1212_v2 = vmul.f32 1.442695, %v1205_v57 }
 0x3de   : > { %3802 = vpow2.f32 %v818_v48  ;;  %v1202_v50 = vsub.f32 %v4298_v7, %v1192_v49  ;;  %v1601_v37 = vpop.xlane.xlu0 %1600 }
 0x3df   : > { %v1605_v9 = vsub.f32 %v4301_v35, %v1601_v37 }
 0x3e0   : > { %v1206_v51 = vmul.f32 1.442695, %v1202_v50 }
 0x3e1   : > { %v1592_v25 = vpop.xlane.xlu1 %1591  ;;  %v1612_v21 = vmul.f32 1.442695, %v1605_v9 }
 0x3e2   : > { %3804 = vpow2.f32 %v1206_v51  ;;  %v1602_v60 = vsub.f32 %v4310_v26, %v1592_v25  ;;  %v2001_v49 = vpop.xlane.xlu0 %2000 }
 0x3e3   : > { %v2005_v51 = vsub.f32 %v4314_v30, %v2001_v49 }
 0x3e4   : > { %v1606_v54 = vmul.f32 1.442695, %v1602_v60 }
 0x3e5   : > { %v1992_v55 = vpop.xlane.xlu1 %1991  ;;  %v2012_v60 = vmul.f32 1.442695, %v2005_v51 }
 0x3e6   : > { %3806 = vpow2.f32 %v1606_v54  ;;  %v2002_v56 = vsub.f32 %v4320_v45, %v1992_v55 }
 0x3e8   : > { %v4381_v8 = vpop.eup %3802  ;;  %v2006_v31 = vmul.f32 1.442695, %v2002_v56 }
 0x3e9   : > { %v813_v62 = vpop.xlane.xlu1 %812  ;;  %v826_v7 = vsel %vm801_vm6, %v4381_v8, 0.0 }
 0x3ea   : > { %3808 = vpow2.f32 %v2006_v31  ;;  %v817_v38 = vsub.f32 %v4328_v41, %v813_v62  ;;  %827 = vadd.xlane.f32.xlu1 %v826_v7 }
 0x3ec   : > { %v4387_v26 = vpop.eup %3804  ;;  %v824_v45 = vmul.f32 1.442695, %v817_v38 }
 0x3ed   : > { %v810_v18 = vpop.xlane.xlu1 %809  ;;  %v1214_v17 = vsel %vm801_vm6, %v4387_v26, 0.0 }
 0x3ee   : > { %3810 = vpow2.f32 %v824_v45  ;;  %v816_v36 = vsub.f32 %v4334_v33, %v810_v18  ;;  %1215 = vadd.xlane.f32.xlu1 %v1214_v17 }
 0x3ef   : > { %3812 = vpow2.f32 %v1212_v2 }
 0x3f0   : > { %v4393_v42 = vpop.eup %3806  ;;  %v822_v41 = vmul.f32 1.442695, %v816_v36 }
 0x3f1   : > { %v1198_v23 = vpop.xlane.xlu1 %1197  ;;  %v1614_v12 = vsel %vm801_vm6, %v4393_v42, 0.0 }
 0x3f2   : > { %3814 = vpow2.f32 %v822_v41  ;;  %v1204_v35 = vsub.f32 %v4339_v34, %v1198_v23  ;;  %1615 = vadd.xlane.f32.xlu1 %v1614_v12 }
 0x3f3   : > { %3816 = vpow2.f32 %v1612_v21 }
 0x3f4   : > { %v4398_v24 = vpop.eup %3808  ;;  %v1210_v29 = vmul.f32 1.442695, %v1204_v35 }
 0x3f5   : > { %v2014_v33 = vsel %vm801_vm6, %v4398_v24, 0.0  ;;  %v1598_v50 = vpop.xlane.xlu1 %1597 }
 0x3f6   : > { %3818 = vpow2.f32 %v1210_v29  ;;  %2015 = vadd.xlane.f32.xlu1 %v2014_v33  ;;  %v1604_v25 = vsub.f32 %v4344_v58, %v1598_v50 }
 0x3f7   : > { %3820 = vpow2.f32 %v2012_v60 }
 0x3f8   : > { %v4402_v11 = vpop.eup %3810  ;;  %v1610_v28 = vmul.f32 1.442695, %v1604_v25 }
 0x3f9   : > { %v835_v43 = vsel %vm801_vm6, %v4402_v11, 0.0  ;;  %v4406_v59 = vpop.eup %3812  ;;  %v4430_v54 = vpop.permute.xlu1 %1862 }
 0x3fa   : > { %836 = vadd.xlane.f32.xlu0 %v835_v43  ;;  %v1223_v34 = vsel %vm801_vm6, %v4406_v59, 0.0  ;;  %3822 = vpow2.f32 %v1610_v28 }
 0x3fc   : > { %v4408_v61 = vpop.eup %3814 }
 0x3fd   : > { %v832_v44 = vsel %vm801_vm6, %v4408_v61, 0.0  ;;  %v4414_v46 = vpop.eup %3816 }
 0x3fe   : > { %1224 = vadd.xlane.f32.xlu0 %v1223_v34  ;;  %833 = vadd.xlane.f32.xlu1 %v832_v44  ;;  %v1623_v47 = vsel %vm801_vm6, %v4414_v46, 0.0 }
 0x400   : > { %v4416_v53 = vpop.eup %3818 }
 0x401   : > { %v1220_v48 = vsel %vm801_vm6, %v4416_v53, 0.0  ;;  %v4433_v31 = vpop.eup %3820 }
 0x402   : > { %1624 = vadd.xlane.f32.xlu0 %v1623_v47  ;;  %1221 = vadd.xlane.f32.xlu1 %v1220_v48  ;;  %v2023_v30 = vsel %vm801_vm6, %v4433_v31, 0.0 }
 0x413   : > { %2110 = vrot.lane.b32.xlu1 %v4171_v1, %s3979_s29 }
 0x418   : > { %2034 = vrot.lane.b32.xlu0 %v4177_v3, %s3979_s29  ;;  %v4435_v3 = vpop.eup %3822 }
 0x419   : > { %v1620_v58 = vsel %vm801_vm6, %v4435_v3, 0.0 }
 0x42a   : > { %v1998_v55 = vpop.xlane.xlu1 %1997 }
 0x42b   : > { %v2004_v56 = vsub.f32 %v4353_v0, %v1998_v55  ;;  %v4447_v0 = vpop.permute.xlu0 %1786 }
 0x42d   : > { %v2010_v57 = vmul.f32 1.442695, %v2004_v56 }
 0x42f   : > { %3824 = vpow2.f32 %v2010_v57 }
 0x437   : > { %2024 = vadd.xlane.f32.xlu0 %v2023_v30  ;;  %1621 = vadd.xlane.f32.xlu1 %v1620_v58 }
 0x439   : > { %v4441_v37 = vpop.eup %3824 }
 0x43a   : > { %v2020_v62 = vsel %vm801_vm6, %v4441_v37, 0.0 }
 0x43b   : > { %2021 = vadd.xlane.f32.xlu1 %v2020_v62 }
 0x44c   : > { %2262 = vrot.lane.b32.xlu1 %v4185_v4, %s3979_s29 }
 0x44d   : > { %2186 = vrot.lane.b32.xlu0 %v4190_v5, %s3979_s29  ;;  %s3984_s29 = smov [#allocation4]  }
 0x45d   : > { %v831_v7 = vpop.xlane.xlu0 %830 }
 0x461   : > { %v1219_v38 = vpop.xlane.xlu0 %1218 }
 0x465   : > { %v1619_v45 = vpop.xlane.xlu0 %1618 }
 0x469   : > { %v2019_v36 = vpop.xlane.xlu0 %2018 }
 0x477   : > { %v828_v2 = vpop.xlane.xlu1 %827 }
 0x478   : > { %3826 = vrcp.f32 %v828_v2 }
 0x479   : > { %3828 = vrcp.f32 %v831_v7 }
 0x47b   : > { %v1216_v9 = vpop.xlane.xlu1 %1215 }
 0x47f   : > { %v1616_v18 = vpop.xlane.xlu1 %1615 }
 0x482   : > { %v3827_v17 = vpop.eup %3826 }
 0x483   : > { %v842_v21 = vmul.f32 %v3827_v17, %v4381_v8  ;;  %v3829_v41 = vpop.eup %3828  ;;  %v4455_v23 = vpop.xlane.xlu1 %2015 }
 0x484   : > { %v843_v4 = vmul.f32 %v3829_v41, %v4361_v32 }
 0x485   : > { %3527 = vmatmul.mubr.msk.f32.vlgmr.msra.gmra.mrb[4].mxu0 %vm801_vm6, %v842_v21 }
 0x486   : > { %3530 = vmatpush3.msra.mxu0 %v4171_v1  ;;  %3531 = vmatprep.mubr.msk.f32.mxu0 %vm3978_vm8, %v3969_v22 }
 0x487   : > { %v837_v12 = vpop.xlane.xlu0 %836  ;;  %3534 = vmatprep.subr.mxu0 %v3969_v22 }
 0x488   : > { %3830 = vrcp.f32 %v837_v12 }
 0x489   : > { %3532 = vmatmul.mubr.msk.f32.vlgmr.msra.gmra.mrb[6].mxu0 %vm801_vm6, %v843_v4  ;;  %3832 = vrcp.f32 %v1219_v38 }
 0x48a   : > { %3535 = vmatpush3.msra.mxu0 %v4190_v5  ;;  %3536 = vmatprep.mubr.msk.f32.mxu0 %vm3978_vm8, %v3969_v22 }
 0x48b   : > { %v1225_v1 = vpop.xlane.xlu0 %1224  ;;  %v834_v8 = vpop.xlane.xlu1 %833  ;;  %3544 = vmatprep.subr.mxu0 %v3969_v22 }
 0x48c   : > { %3834 = vrcp.f32 %v834_v8 }
 0x48d   : > { %3836 = vrcp.f32 %v1225_v1 }
 0x48e   : > { %3838 = vrcp.f32 %v1216_v9 }
 0x48f   : > { %v1222_v32 = vpop.xlane.xlu1 %1221  ;;  %3840 = vrcp.f32 %v1619_v45  ;;  %v1625_v33 = vpop.xlane.xlu0 %1624 }
 0x490   : > { %3842 = vrcp.f32 %v1222_v32 }
 0x491   : > { %3844 = vrcp.f32 %v1625_v33 }
 0x492   : > { %v3831_v35 = vpop.eup %3830  ;;  %3846 = vrcp.f32 %v1616_v18 }
 0x493   : > { %v845_v29 = vmul.f32 %v3831_v35, %v4402_v11  ;;  %v3833_v43 = vpop.eup %3832  ;;  %3848 = vrcp.f32 %v2019_v36 }
 0x494   : > { %v1231_v34 = vmul.f32 %v3833_v43, %v4365_v40 }
 0x495   : > { %3542 = vmatmul.mubr.msk.f32.vlgmr.msra.gmra.mrb[4].mxu1 %vm801_vm6, %v845_v29 }
 0x496   : > { %3550 = vmatpush3.msra.mxu1 %v4203_v13  ;;  %3551 = vmatprep.mubr.msk.f32.mxu1 %vm3978_vm8, %v3969_v22  ;;  %v3835_v5 = vpop.eup %3834 }
 0x497   : > { %3559 = vmatprep.subr.mxu1 %v3969_v22  ;;  %v3837_v44 = vpop.eup %3836  ;;  %v844_v11 = vmul.f32 %v3835_v5, %v4408_v61 }
 0x498   : > { %v3839_v47 = vpop.eup %3838  ;;  %v1233_v13 = vmul.f32 %v3837_v44, %v4406_v59 }
 0x499   : > { %3552 = vmatmul.mubr.msk.f32.vlgmr.msra.gmra.mrb[6].mxu1 %vm801_vm6, %v1231_v34  ;;  %3537 = vmatmul.mubr.msk.f32.vlgmr.msra.gmra.mrb[8].mxu0 %vm801_vm6, %v844_v11  ;;  %v3841_v40 = vpop.eup %3840  ;;  %v1230_v48 = vmul.f32 %v3839_v47, %v4387_v26 }
 0x49a   : > { %3560 = vmatpush3.msra.mxu1 %v4211_v19  ;;  %3545 = vmatpush3.msra.mxu0 %v4209_v16  ;;  %v3843_v61 = vpop.eup %3842  ;;  %v1631_v16 = vmul.f32 %v3841_v40, %v4369_v6  ;;  %v2435_v40 = vld [vmem:[%s4739_s5 + $0x8] sm:$0xff] }
 0x49b   : > { %3546 = vmatprep.mubr.msk.f32.mxu0 %vm3978_vm8, %v3969_v22  ;;  %3554 = vmatprep.subr.mxu0 %v3969_v22  ;;  %v3845_v19 = vpop.eup %3844  ;;  %v1232_v26 = vmul.f32 %v3843_v61, %v4416_v53  ;;  %v2111_v53 = vpop.permute.xlu1 %2110  ;;  %v2436_v61 = vld [vmem:[%s4739_s5 + $0x10] sm:$0xff] }
 0x49c   : > { %3561 = vmatprep.mubr.msk.f32.mxu1 %vm3978_vm8, %v3969_v22  ;;  %3569 = vmatprep.subr.mxu1 %v3969_v22  ;;  %v3847_v59 = vpop.eup %3846 }
 0x49d   : > { %3562 = vmatmul.mubr.msk.f32.vlgmr.msra.gmra.mrb[8].mxu1 %vm801_vm6, %v1233_v13  ;;  %3547 = vmatmul.mubr.msk.f32.vlgmr.msra.gmra.mrb[10].mxu0 %vm801_vm6, %v1230_v48  ;;  %v1630_v6 = vmul.f32 %v3847_v59, %v4393_v42  ;;  %v2035_v42 = vpop.permute.xlu0 %2034  ;;  %v2434_v13 = vld [vmem:[%s4739_s5] sm:$0xff] }
 0x49e   : > { %3570 = vmatpush3.msra.mxu1 %v4205_v14  ;;  %3555 = vmatpush3.msra.mxu0 %v4213_v20  ;;  %v1633_v14 = vmul.f32 %v3845_v19, %v4414_v46  ;;  %v3849_v20 = vpop.eup %3848  ;;  %v3684_v48 = vpack.c.bf16 %v2435_v40, %v2434_v13  ;;  %v2438_v19 = vld [vmem:[%s4739_s5 + $0x20] sm:$0xff] }
 0x49f   : > { %3556 = vmatprep.mubr.msk.f32.mxu0 %vm3978_vm8, %v3969_v22  ;;  %3564 = vmatprep.subr.mxu0 %v3969_v22 }
 0x4a0   : > { %3571 = vmatprep.mubr.msk.f32.mxu1 %vm3978_vm8, %v3969_v22  ;;  %3579 = vmatprep.subr.mxu1 %v3969_v22 }
 0x4a1   : > { %3572 = vmatmul.mubr.msk.f32.vlgmr.msra.gmra.mrb[10].mxu1 %vm801_vm6, %v1631_v16  ;;  %3557 = vmatmul.mubr.msk.f32.vlgmr.msra.gmra.mrb[12].mxu0 %vm801_vm6, %v1232_v26  ;;  %v2437_v16 = vld [vmem:[%s4739_s5 + $0x18] sm:$0xff] }
 0x4a2   : > { %3580 = vmatpush3.msra.mxu1 %v4430_v54  ;;  %3565 = vmatpush3.msra.mxu0 %v4207_v15  ;;  %v2031_v15 = vmul.f32 %v3849_v20, %v4373_v10  ;;  %v3688_v59 = vpack.c.bf16 %v2437_v16, %v2436_v61 }
 0x4a3   : > { %3566 = vmatprep.mubr.msk.f32.mxu0 %vm3978_vm8, %v3969_v22  ;;  %3574 = vmatprep.subr.mxu0 %v3969_v22 }
 0x4a4   : > { %3581 = vmatprep.mubr.msk.f32.mxu1 %vm3978_vm8, %v3969_v22  ;;  %3589 = vmatprep.subr.mxu1 %v3969_v22 }
 0x4a5   : > { %3582 = vmatmul.mubr.msk.f32.vlgmr.msra.gmra.mrb[12].mxu1 %vm801_vm6, %v1633_v14  ;;  %3567 = vmatmul.mubr.msk.f32.vlgmr.msra.gmra.mrb[14].mxu0 %vm801_vm6, %v1630_v6  ;;  %v2439_v14 = vld [vmem:[%s4739_s5 + $0x28] sm:$0xff]  ;;  %v2440_v6 = vld [vmem:[%s4739_s5 + $0x30] sm:$0xff] }
 0x4a6   : > { %3590 = vmatpush3.msra.mxu1 %v2111_v53  ;;  %3575 = vmatpush3.msra.mxu0 %v4447_v0  ;;  %v3692_v20 = vpack.c.bf16 %v2439_v14, %v2438_v19  ;;  %v2441_v53 = vld [vmem:[%s4739_s5 + $0x38] sm:$0xff] }
 0x4a7   : > { %3591 = vmatprep.mubr.msk.f32.mxu1 %vm3978_vm8, %v3969_v22  ;;  %3599 = vmatprep.subr.mxu1 %v3969_v22 }
 0x4a8   : > { %3576 = vmatprep.mubr.msk.f32.mxu0 %vm3978_vm8, %v3969_v22  ;;  %3584 = vmatprep.subr.mxu0 %v3969_v22 }
 0x4a9   : > { %3592 = vmatmul.mubr.msk.f32.vlgmr.msra.gmra.mrb[14].mxu1 %vm801_vm6, %v2031_v15 }
 0x4aa   : > { %3601 = vmatprep.mubr.msk.f32.mxu1 %vm3978_vm8, %v3969_v22 }
 0x4c4   : > { %v2025_v46 = vpop.xlane.xlu0 %2024  ;;  %v1622_v10 = vpop.xlane.xlu1 %1621 }
 0x4c5   : > { %3850 = vrcp.f32 %v2025_v46 }
 0x4c6   : > { %3852 = vrcp.f32 %v1622_v10 }
 0x4c7   : > { %3854 = vrcp.f32 %v4455_v23 }
 0x4c8   : > { %v2022_v49 = vpop.xlane.xlu1 %2021  ;;  %v2187_v57 = vpop.permute.xlu0 %2186 }
 0x4c9   : > { %3856 = vrcp.f32 %v2022_v49  ;;  %v3383_v49 = vld [vmem:[%s4738_s4] ss:$0 sm:$0xff] }
 0x4cc   : > { %v2263_v50 = vpop.permute.xlu1 %2262 }
 0x4cd   : > { %3600 = vmatpush3.msra.mxu1 %v2263_v50 }
 0x4cf   : > { %v3851_v51 = vpop.eup %3850 }
 0x4d0   : > { %v3853_v25 = vpop.eup %3852  ;;  %v2033_v60 = vmul.f32 %v3851_v51, %v4433_v31 }
 0x4d1   : > { %v1632_v28 = vmul.f32 %v3853_v25, %v4435_v3  ;;  %v3855_v54 = vpop.eup %3854 }
 0x4d2   : > { %3602 = vmatmul.mubr.msk.f32.vlgmr.msra.gmra.mrb[16].mxu1 %vm801_vm6, %v2033_v60  ;;  %v2030_v55 = vmul.f32 %v3855_v54, %v4398_v24  ;;  %v2443_v54 = vld [vmem:[%s4740_s6 + $0x8] sm:$0xff] }
 0x4d3   : > { %3577 = vmatmul.mubr.msk.f32.vlgmr.msra.gmra.mrb[16].mxu0 %vm801_vm6, %v1632_v28  ;;  %v3857_v56 = vpop.eup %3856  ;;  %v2442_v28 = vld [vmem:[%s4740_s6] sm:$0xff] }
 0x4d4   : > { %3585 = vmatpush3.msra.mxu0 %v2035_v42  ;;  %3586 = vmatprep.mubr.msk.f32.mxu0 %vm3978_vm8, %v3969_v22  ;;  %v2032_v31 = vmul.f32 %v3857_v56, %v4441_v37  ;;  %v3696_v42 = vpack.c.bf16 %v2441_v53, %v2440_v6 }
 0x4d5   : > { %3594 = vmatprep.subr.mxu0 %v3969_v22 }
 0x4d7   : > { %3587 = vmatmul.mubr.msk.f32.vlgmr.msra.gmra.mrb[18].mxu0 %vm801_vm6, %v2030_v55  ;;  %v2444_v55 = vld [vmem:[%s4740_s6 + $0x10] sm:$0xff] }
 0x4d8   : > { %3595 = vmatpush3.msra.mxu0 %v2187_v57  ;;  %3596 = vmatprep.mubr.msk.f32.mxu0 %vm3978_vm8, %v3969_v22  ;;  %v3700_v57 = vpack.c.bf16 %v2443_v54, %v2442_v28 }
 0x4d9   : > { %3685 = vmatprep.subr.bf16.mxu0 %v3684_v48 }
 0x4da   : > { %3701 = vmatprep.subr.bf16.mxu1 %v3700_v57 }
 0x4db   : > { %3597 = vmatmul.mubr.msk.f32.vlgmr.msra.gmra.mrb[20].mxu0 %vm801_vm6, %v2032_v31  ;;  %v2445_v31 = vld [vmem:[%s4740_s6 + $0x18] sm:$0xff]  ;;  %3703 = vmatpush3.bf16.msra.mxu1 %v3700_v57 }
 0x4dc   : > { %3687 = vmatpush3.bf16.msra.mxu0 %v3684_v48 }
 0x4dd   : > { %3689 = vmatprep.subr.bf16.mxu0 %v3688_v59 }
 0x4e0   : > { %3691 = vmatpush3.bf16.msra.mxu0 %v3688_v59 }
 0x4e1   : > { %3693 = vmatprep.subr.bf16.mxu0 %v3692_v20 }
 0x4e4   : > { %3695 = vmatpush3.bf16.msra.mxu0 %v3692_v20 }
 0x4e5   : > { %3697 = vmatprep.subr.bf16.mxu0 %v3696_v42 }
 0x4e8   : > { %3699 = vmatpush3.bf16.msra.mxu0 %v3696_v42 }
 0x4e9   : > { %3650 = vmatprep.subr.mxu0 %v3969_v22 }
 0x558   : > { %v4534_v3 = vpop.f32.mrb[4].mxu0 }
 0x559   : > { %v3528_v30 = vpop.f32.mrb[5].mxu0 }
 0x55a   : > { %v3704_v30 = vpack.c.bf16 %v2445_v31, %v2444_v55 }
 0x55c   : > { %v4536_v58 = vpop.f32.mrb[6].mxu0  ;;  %3705 = vmatprep.subr.bf16.mxu1 %v3704_v30 }
 0x55d   : > { %v3533_v24 = vpop.f32.mrb[7].mxu0  ;;  %3707 = vmatpush3.bf16.msra.mxu1 %v3704_v30 }
 0x55e   : > { %3640 = vmatprep.subr.mxu1 %v3969_v22 }
 0x568   : > { %v4538_v62 = vpop.f32.mrb[4].mxu1 }
 0x569   : > { %v3543_v0 = vpop.f32.mrb[5].mxu1 }
 0x56c   : > { %v1382_v7 = vpop.f32.mrb[6].mxu1  ;;  %v4540_v38 = vpop.f32.mrb[8].mxu0 }
 0x56d   : > { %v3553_v2 = vpop.f32.mrb[7].mxu1  ;;  %2344 = vrot.lane.b32.xlu1 %v1382_v7, %s3980_s30  ;;  %v3538_v9 = vpop.f32.mrb[9].mxu0 }
 0x570   : > { %v1534_v45 = vpop.f32.mrb[8].mxu1  ;;  %v1306_v37 = vpop.f32.mrb[10].mxu0 }
 0x571   : > { %v3563_v18 = vpop.f32.mrb[9].mxu1  ;;  %2348 = vrot.lane.b32.xlu1 %v1534_v45, %s3980_s30  ;;  %2342 = vrot.lane.b32.xlu0 %v1306_v37, %s3980_s30  ;;  %v3548_v17 = vpop.f32.mrb[11].mxu0 }
 0x574   : > { %v1782_v36 = vpop.f32.mrb[10].mxu1  ;;  %v1458_v21 = vpop.f32.mrb[12].mxu0 }
 0x575   : > { %v3573_v41 = vpop.f32.mrb[11].mxu1  ;;  %2360 = vrot.lane.b32.xlu1 %v1782_v36, %s3981_s9  ;;  %2346 = vrot.lane.b32.xlu0 %v1458_v21, %s3980_s30  ;;  %v3558_v4 = vpop.f32.mrb[13].mxu0  ;;  %s3906_s30 = sshll.u32 %s3984_s29, 4  ;;  %s3907_s30 = int_to_ptr.vmem [resolvable:$false] %s3906_s30 }
 0x578   : > { %v1934_v23 = vpop.f32.mrb[12].mxu1  ;;  %v1706_v12 = vpop.f32.mrb[14].mxu0 }
 0x579   : > { %v3583_v1 = vpop.f32.mrb[13].mxu1  ;;  %2358 = vrot.lane.b32.xlu0 %v1706_v12, %s3981_s9  ;;  %v3568_v8 = vpop.f32.mrb[15].mxu0 }
 0x57c   : > { %v2182_v32 = vpop.f32.mrb[14].mxu1 }
 0x57d   : > { %2376 = vrot.lane.b32.xlu1 %v2182_v32, %s3982_s14  ;;  %v3593_v35 = vpop.f32.mrb[15].mxu1 }
 0x581   : > { %2364 = vrot.lane.b32.xlu1 %v1934_v23, %s3981_s9 }
 0x5a5   : > { %v2334_v29 = vpop.f32.mrb[16].mxu1 }
 0x5a6   : > { %v1858_v33 = vpop.f32.mrb[16].mxu0  ;;  %2380 = vrot.lane.b32.xlu1 %v2334_v29, %s3982_s14  ;;  %v3603_v43 = vpop.f32.mrb[17].mxu1 }
 0x5a7   : > { %v3578_v5 = vpop.f32.mrb[17].mxu0 }
 0x5aa   : > { %v2106_v34 = vpop.f32.mrb[18].mxu0 }
 0x5ab   : > { %2374 = vrot.lane.b32.xlu0 %v2106_v34, %s3982_s14  ;;  %v3588_v44 = vpop.f32.mrb[19].mxu0 }
 0x5ae   : > { %v2258_v11 = vpop.f32.mrb[20].mxu0 }
 0x5af   : > { %2362 = vrot.lane.b32.xlu0 %v1858_v33, %s3981_s9  ;;  %v3598_v47 = vpop.f32.mrb[21].mxu0  ;;  %s3983_s9 = smov 127  }
 0x5b3   : > { %2378 = vrot.lane.b32.xlu0 %v2258_v11, %s3982_s14  ;;  %s276_s14 = sand.u32 1, %s3958_s11  }
 0x5b4   : > { %s3355_s16 = sshll.u32 %s276_s14, 5  ;;  %s4693_s28 = scalar_lea.sflag [#allocation5], %s276_s14 }
 0x5b5   : > { %s278_s22 = scalar_lea.vmem [#allocation4], %s3355_s16 }
 0x5b6   : > { %s3289_s23 = sshll.u32 %s278_s22, 4  ;;  %s4685_s23 = int_to_ptr.vmem [resolvable:$true] %s3289_s23 }
 0x5b7   : > { %s3902_s13 = scalar_lea.vmem %s4685_s23, 512  ;;  %p3909_p5 = scmp.lt.s32.totalorder %s4685_s23, %s3907_s30 }
 0x5b8   : > { %p3903_p2 = scmp.ne.s32.totalorder %s4685_s23, %s3902_s13 }
 0x5ba   : > { %p3904_p3 = pnand %p3903_p2, %p4073_p10 }
 0x5bc   : > { %p3905_p4 = pneg %p3904_p3 }
 0x5df   : > { %v2345_v26 = vpop.permute.xlu1 %2344 }
 0x5e0   : > { %v2388_v10 = vsel %vm2386_vm9, %v4536_v58, %v2345_v26 }
 0x5e3   : > { %v2349_v15 = vpop.permute.xlu1 %2348  ;;  %v2343_v45 = vpop.permute.xlu0 %2342 }
 0x5e4   : > { %v2390_v21 = vsel %vm2386_vm9, %v4538_v62, %v2349_v15  ;;  %v2387_v35 = vsel %vm2386_vm9, %v4534_v3, %v2343_v45 }
 0x5e7   : > { %v2361_v46 = vpop.permute.xlu1 %2360  ;;  %v2347_v18 = vpop.permute.xlu0 %2346 }
 0x5e8   : > { %v2392_v50 = vsel %vm320_vm2, %v2388_v10, %v2361_v46  ;;  %v2389_v48 = vsel %vm2386_vm9, %v4540_v38, %v2347_v18 }
 0x5eb   : > { %v2359_v12 = vpop.permute.xlu0 %2358 }
 0x5ec   : > { %v2391_v33 = vsel %vm320_vm2, %v2387_v35, %v2359_v12 }
 0x5ef   : > { %v2377_v51 = vpop.permute.xlu1 %2376 }
 0x5f0   : > { %v2397_v25 = vsel %vm2395_vm10, %v2392_v50, %v2377_v51 }
 0x5f1   : > { %v2407_v60 = vadd.f32 %v3383_v49, %v2397_v25 }
 0x5f3   : > { %v2415_v56 = vmin.f32 %v2407_v60, 0.0  ;;  %vm2411_vm11 = vcmp.gt.f32.partialorder %v2407_v60, 0.0  ;;  %v2365_v36 = vpop.permute.xlu1 %2364 }
 0x5f4   : > { %v2394_v4 = vsel %vm320_vm2, %v2390_v21, %v2365_v36 }
 0x5f5   : > { %v2420_v58 = vmul.f32 1.442695, %v2415_v56 }
 0x5f7   : > { %3858 = vpow2.f32 %v2420_v58 }
 0x601   : > { %v3859_v24 = vpop.eup %3858 }
 0x602   : > { %v3385_v0 = vadd.f32 -1.0, %v3859_v24 }
 0x604   : > { %v2431_v7 = vsel %vm2411_vm11, %v2407_v60, %v3385_v0 }
 0x605   : > { %v2448_v2 = vmul.f32 %v4139_v27, %v2431_v7 }
 0x607   : > { %v2458_v9 = vsel %vm507_vm3, %v2448_v2, 0.0 }
 0x608   : > { %v2459_v37 = vrot.slane %v2458_v9, 4 }
 0x60a   : > { %v2460_v17 = vadd.f32 %v2459_v37, %v2458_v9 }
 0x60c   : > { %v2461_v41 = vrot.slane %v2460_v17, 2 }
 0x60e   : > { %v2462_v32 = vadd.f32 %v2461_v41, %v2460_v17 }
 0x610   : > { %v2463_v62 = vrot.slane %v2462_v32, 1 }
 0x612   : > { %v2464_v13 = vadd.f32 %v2463_v62, %v2462_v32 }
 0x614   : > { %v2480_v19 = vmul.f32 %v2464_v13, %v4149_v63 }
 0x616   : > { %v4602_v20 = vsub.f32 %v2431_v7, %v2480_v19 }
 0x618   : > { %v2381_v23 = vpop.permute.xlu1 %2380  ;;  %v2488_v46 = vmul.f32 %v4139_v27, %v4602_v20 }
 0x619   : > { %v2399_v1 = vsel %vm2395_vm10, %v2394_v4, %v2381_v23 }
 0x61a   : > { %v2409_v8 = vadd.f32 %v3383_v49, %v2399_v1  ;;  %v2492_v25 = vmul.f32 %v2488_v46, %v2488_v46 }
 0x61c   : > { %v2417_v29 = vmin.f32 %v2409_v8, 0.0  ;;  %vm2413_vm12 = vcmp.gt.f32.partialorder %v2409_v8, 0.0  ;;  %v2502_v57 = vsel %vm507_vm3, %v2492_v25, 0.0 }
 0x61d   : > { %v2375_v43 = vpop.permute.xlu0 %2374  ;;  %v2503_v7 = vrot.slane %v2502_v57, 4 }
 0x61e   : > { %v2424_v5 = vmul.f32 1.442695, %v2417_v29  ;;  %v2396_v34 = vsel %vm2395_vm10, %v2391_v33, %v2375_v43 }
 0x61f   : > { %v2406_v44 = vadd.f32 %v3383_v49, %v2396_v34  ;;  %v2504_v36 = vadd.f32 %v2503_v7, %v2502_v57 }
 0x620   : > { %3860 = vpow2.f32 %v2424_v5 }
 0x621   : > { %v2414_v11 = vmin.f32 %v2406_v44, 0.0  ;;  %v2363_v47 = vpop.permute.xlu0 %2362  ;;  %vm2410_vm13 = vcmp.gt.f32.partialorder %v2406_v44, 0.0  ;;  %v2505_v32 = vrot.slane %v2504_v36, 2 }
 0x622   : > { %v2393_v3 = vsel %vm320_vm2, %v2389_v48, %v2363_v47 }
 0x623   : > { %v2418_v40 = vmul.f32 1.442695, %v2414_v11  ;;  %v2506_v62 = vadd.f32 %v2505_v32, %v2504_v36 }
 0x625   : > { %3862 = vpow2.f32 %v2418_v40  ;;  %v2379_v61 = vpop.permute.xlu0 %2378 }
 0x626   : > { %v2398_v16 = vsel %vm2395_vm10, %v2393_v3, %v2379_v61  ;;  %v2507_v3 = vrot.slane %v2506_v62, 1 }
 0x627   : > { %v2408_v26 = vadd.f32 %v3383_v49, %v2398_v16 }
 0x629   : > { %v2416_v59 = vmin.f32 %v2408_v26, 0.0  ;;  %vm2412_vm14 = vcmp.gt.f32.partialorder %v2408_v26, 0.0 }
 0x62a   : > { %v3861_v14 = vpop.eup %3860 }
 0x62b   : > { %v3387_v6 = vadd.f32 -1.0, %v3861_v14  ;;  %v2422_v53 = vmul.f32 1.442695, %v2416_v59 }
 0x62d   : > { %v2433_v15 = vsel %vm2413_vm12, %v2409_v8, %v3387_v6  ;;  %3864 = vpow2.f32 %v2422_v53  ;;  %v2508_v6 = vadd.f32 %v2507_v3, %v2506_v62 }
 0x62e   : > { %v2450_v42 = vmul.f32 %v4139_v27, %v2433_v15 }
 0x62f   : > { %v3863_v38 = vpop.eup %3862 }
 0x630   : > { %v2472_v10 = vsel %vm507_vm3, %v2450_v42, 0.0  ;;  %v3384_v50 = vadd.f32 -1.0, %v3863_v38 }
 0x631   : > { %v2473_v51 = vrot.slane %v2472_v10, 4 }
 0x632   : > { %v2430_v49 = vsel %vm2410_vm13, %v2406_v44, %v3384_v50 }
 0x633   : > { %v2474_v60 = vadd.f32 %v2473_v51, %v2472_v10  ;;  %v2447_v28 = vmul.f32 %v4139_v27, %v2430_v49  ;;  %v2524_v10 = vmul.f32 %v2508_v6, %v4149_v63 }
 0x635   : > { %v2475_v54 = vrot.slane %v2474_v60, 2  ;;  %v2451_v55 = vsel %vm507_vm3, %v2447_v28, 0.0  ;;  %v2528_v28 = vadd.f32 1e-05, %v2524_v10 }
 0x636   : > { %v2452_v56 = vrot.slane %v2451_v55, 4 }
 0x637   : > { %v2476_v31 = vadd.f32 %v2475_v54, %v2474_v60  ;;  %v3865_v30 = vpop.eup %3864  ;;  %3866 = vrsqrt.f32 %v2528_v28 }
 0x638   : > { %v2453_v58 = vadd.f32 %v2452_v56, %v2451_v55  ;;  %v3386_v0 = vadd.f32 -1.0, %v3865_v30 }
 0x639   : > { %v2477_v24 = vrot.slane %v2476_v31, 1 }
 0x63a   : > { %v2454_v2 = vrot.slane %v2453_v58, 2  ;;  %v2432_v45 = vsel %vm2412_vm14, %v2408_v26, %v3386_v0 }
 0x63b   : > { %v2478_v9 = vadd.f32 %v2477_v24, %v2476_v31  ;;  %v2449_v18 = vmul.f32 %v4139_v27, %v2432_v45 }
 0x63c   : > { %v2455_v37 = vadd.f32 %v2454_v2, %v2453_v58 }
 0x63d   : > { %v2482_v17 = vmul.f32 %v2478_v9, %v4149_v63  ;;  %v2465_v41 = vsel %vm507_vm3, %v2449_v18, 0.0 }
 0x63e   : > { %v2456_v21 = vrot.slane %v2455_v37, 1  ;;  %v2466_v23 = vrot.slane %v2465_v41, 4 }
 0x63f   : > { %v4614_v4 = vsub.f32 %v2433_v15, %v2482_v17 }
 0x640   : > { %v2457_v12 = vadd.f32 %v2456_v21, %v2455_v37  ;;  %v2467_v8 = vadd.f32 %v2466_v23, %v2465_v41 }
 0x641   : > { %v2490_v1 = vmul.f32 %v4139_v27, %v4614_v4  ;;  %v3867_v9 = vpop.eup %3866 }
 0x642   : > { %v2479_v35 = vmul.f32 %v2457_v12, %v4149_v63  ;;  %v2468_v33 = vrot.slane %v2467_v8, 2  ;;  %v2536_v18 = vmul.f32 %v3867_v9, %v4602_v20 }
 0x643   : > { %v2494_v29 = vmul.f32 %v2490_v1, %v2490_v1 }
 0x644   : > { %v2483_v43 = vsub.f32 %v2430_v49, %v2479_v35  ;;  %v2469_v34 = vadd.f32 %v2468_v33, %v2467_v8 }
 0x645   : > { %v2516_v5 = vsel %vm507_vm3, %v2494_v29, 0.0 }
 0x646   : > { %v2517_v44 = vrot.slane %v2516_v5, 4  ;;  %v2487_v11 = vmul.f32 %v4139_v27, %v2483_v43  ;;  %v2470_v47 = vrot.slane %v2469_v34, 1 }
 0x648   : > { %v2518_v13 = vadd.f32 %v2517_v44, %v2516_v5  ;;  %v2491_v40 = vmul.f32 %v2487_v11, %v2487_v11  ;;  %v2471_v48 = vadd.f32 %v2470_v47, %v2469_v34 }
 0x64a   : > { %v2495_v61 = vsel %vm507_vm3, %v2491_v40, 0.0  ;;  %v2519_v16 = vrot.slane %v2518_v13, 2  ;;  %v2481_v26 = vmul.f32 %v2471_v48, %v4149_v63 }
 0x64b   : > { %v2496_v19 = vrot.slane %v2495_v61, 4 }
 0x64c   : > { %v2485_v14 = vsub.f32 %v2432_v45, %v2481_v26  ;;  %v2520_v53 = vadd.f32 %v2519_v16, %v2518_v13 }
 0x64d   : > { %v2497_v59 = vadd.f32 %v2496_v19, %v2495_v61 }
 0x64e   : > { %v2489_v42 = vmul.f32 %v4139_v27, %v2485_v14  ;;  %v2521_v50 = vrot.slane %v2520_v53, 1 }
 0x64f   : > { %v2498_v15 = vrot.slane %v2497_v59, 2 }
 0x650   : > { %v2493_v46 = vmul.f32 %v2489_v42, %v2489_v42  ;;  %v2522_v55 = vadd.f32 %v2521_v50, %v2520_v53 }
 0x651   : > { %v2499_v38 = vadd.f32 %v2498_v15, %v2497_v59 }
 0x652   : > { %v2509_v49 = vsel %vm507_vm3, %v2493_v46, 0.0  ;;  %v2526_v27 = vmul.f32 %v2522_v55, %v4149_v63 }
 0x653   : > { %v2500_v51 = vrot.slane %v2499_v38, 1  ;;  %v2510_v25 = vrot.slane %v2509_v49, 4 }
 0x654   : > { %v2530_v0 = vadd.f32 1e-05, %v2526_v27 }
 0x655   : > { %v2501_v60 = vadd.f32 %v2500_v51, %v2499_v38  ;;  %v2511_v54 = vadd.f32 %v2510_v25, %v2509_v49 }
 0x657   : > { %v2523_v56 = vmul.f32 %v2501_v60, %v4149_v63  ;;  %v2512_v57 = vrot.slane %v2511_v54, 2 }
 0x659   : > { %v2527_v31 = vadd.f32 1e-05, %v2523_v56  ;;  %v2513_v30 = vadd.f32 %v2512_v57, %v2511_v54 }
 0x65b   : > { %3868 = vrsqrt.f32 %v2527_v31  ;;  %v2514_v58 = vrot.slane %v2513_v30, 1 }
 0x65c   : > { %3870 = vrsqrt.f32 %v2530_v0 }
 0x65d   : > { %v2515_v24 = vadd.f32 %v2514_v58, %v2513_v30 }
 0x65f   : > { %v2525_v7 = vmul.f32 %v2515_v24, %v4149_v63 }
 0x661   : > { %v2529_v2 = vadd.f32 1e-05, %v2525_v7 }
 0x663   : > { %3872 = vrsqrt.f32 %v2529_v2 }
 0x665   : > { %v3869_v45 = vpop.eup %3868 }
 0x666   : > { %v2535_v37 = vmul.f32 %v3869_v45, %v2483_v43  ;;  %v3871_v17 = vpop.eup %3870 }
 0x667   : > { %v2538_v41 = vmul.f32 %v3871_v17, %v4614_v4 }
 0x668   : > { %3620 = vmatprep.mubr.msk.f32.mxu0 %vm507_vm3, %v2535_v37 }
 0x669   : > { %3621 = vmatmul.mubr.msk.f32.vlgmr.msra.gmra.mrb[22].mxu0 %vm507_vm3, %v2536_v18 }
 0x66d   : > { %v3873_v36 = vpop.eup %3872 }
 0x66e   : > { %v2537_v21 = vmul.f32 %v3873_v36, %v2485_v14 }
 0x670   : > { %3623 = vmatprep.mubr.msk.f32.mxu0 %vm507_vm3, %v2537_v21 }
 0x671   : > { %3624 = vmatmul.mubr.msk.f32.gmra.mrb[24].mxu0 %vm507_vm3, %v2538_v41 }
 0x672   : > { %3652 = vmatprep.mubr.msk.f32.mxu0 %vm3978_vm8, %v3969_v22 }
 0x73c   : > { %v4637_v63 = vpop.f32.mrb[22].mxu0 }
 0x73d   : > { %v2617_v23 = vpop.f32.mrb[23].mxu0 }
 0x73e   : > { %3634 = vmatprep.mubr.msk.f32.mxu1 %vm320_vm2, %v2617_v23 }
 0x73f   : > { %3635 = vmatmul.mubr.msk.f32.vlgmr.msra.gmra.mrb[18].mxu1 %vm320_vm2, %v4637_v63 }
 0x740   : > { %3641 = vmatpush3.msra.mxu1 %v2617_v23 }
 0x741   : > { %3645 = vmatprep.subr.mxu1 %v3969_v22 }
 0x744   : > { %v4643_v20 = vpop.f32.mrb[24].mxu0 }
 0x745   : > { %v2627_v4 = vpop.f32.mrb[25].mxu0 }
 0x746   : > { %3637 = vmatprep.mubr.msk.f32.mxu1 %vm320_vm2, %v2627_v4  ;;  %3651 = vmatpush3.msra.mxu0 %v2627_v4 }
 0x747   : > { %3638 = vmatmul.mubr.msk.f32.gmra.mrb[20].mxu1 %vm320_vm2, %v4643_v20 }
 0x748   : > { %3642 = vmatprep.mubr.msk.f32.mxu1 %vm3978_vm8, %v3969_v22 }
 0x812   : > { %v3636_v12 = vpop.f32.mrb[18].mxu1 }
 0x813   : > { %2739 = vrot.lane.b32.xlu1 %v3636_v12, %s3983_s9  ;;  %v2714_v1 = vpop.f32.mrb[19].mxu1 }
 0x814   : > { %2737 = vrot.lane.b32.xlu0 %v2714_v1, %s3983_s9 }
 0x81a   : > { %v3639_v8 = vpop.f32.mrb[20].mxu1 }
 0x81b   : > { %2743 = vrot.lane.b32.xlu1 %v3639_v8, %s3983_s9  ;;  %v2724_v32 = vpop.f32.mrb[21].mxu1 }
 0x81c   : > { %2741 = vrot.lane.b32.xlu0 %v2724_v32, %s3983_s9  ;;  %s3908_s9 = scalar_lea.vmem %s3907_s30, 1024 }
 0x81d   : > { %p3910_p6 = scmp.lt.s32.totalorder %s3908_s9, %s3902_s13 }
 0x81f   : > { %2882 = vperm.xlu1 %3783, %v3636_v12   ;;  %p3911_p7 = por %p3910_p6, %p3909_p5 }
 0x820   : > { %2878 = vperm.xlu0 %3782, %v2714_v1  }
 0x821   : > { %p3912_p8 = pnand %p3911_p7, %p3905_p4 }
 0x823   : > { %2886 = vperm.xlu1 %3783, %v2724_v32  }
 0x824   : > { %2890 = vperm.xlu0 %3782, %v3639_v8  }
 0x885   : > { %v2740_v35 = vpop.permute.xlu1 %2739 }
 0x886   : > { %v2738_v29 = vpop.permute.xlu0 %2737  ;;  %2781 = vxpose.xlu0.b32.start.end [1/1] (short) (narrow) %v2740_v35, 8 }
 0x887   : > { %2749 = vxpose.xlu1.b32.start.end [1/1] (short) (narrow) %v2738_v29, 8 }
 0x88d   : > { %v2744_v33 = vpop.permute.xlu1 %2743 }
 0x88e   : > { %2845 = vxpose.xlu0.b32.start.end [1/1] (short) (narrow) %v2744_v33, 8  ;;  %v2742_v43 = vpop.permute.xlu0 %2741 }
 0x892   : > { %2813 = vxpose.xlu0.b32.start.end [1/1] (short) (narrow) %v2742_v43, 8 }
 0x89e   : > { %v2883_v34 = vpop.permute.xlu1 %2882 }
 0x89f   : > { %v2879_v5 = vpop.permute.xlu0 %2878 }
 0x8a2   : > { %v2887_v44 = vpop.permute.xlu1 %2886 }
 0x8a3   : > { %v2891_v62 = vpop.permute.xlu0 %2890 }
 0x906   : > { %v2797_v11 = vpop.trf.xlu0 }
 0x907   : > { %v2900_v47 = vrot.slane %v2797_v11, %v4228_v39  ;;  %v2765_v13 = vpop.trf.xlu1 }
 0x908   : > { %v2896_v40 = vrot.slane %v2765_v13, %v4228_v39 }
 0x909   : > { %v2910_v48 = vadd.f32 %v2900_v47, %v2883_v34 }
 0x90a   : > { %v2909_v3 = vadd.f32 %v2896_v40, %v2879_v5 }
 0x90b   : > { %v2918_v61 = vmul.f32 0.2, %v2910_v48  ;;  %vm2914_vm3 = vcmp.ge.f32.partialorder %v2910_v48, 0.0 }
 0x90c   : > { %v2917_v16 = vmul.f32 0.2, %v2909_v3  ;;  %vm2913_vm15 = vcmp.ge.f32.partialorder %v2909_v3, 0.0 }
 0x90d   : > { %v2922_v19 = vsel %vm2914_vm3, %v2910_v48, %v2918_v61 }
 0x90e   : > { %v2926_v26 = vadd.f32 %v2922_v19, %v4245_v52  ;;  %v2921_v59 = vsel %vm2913_vm15, %v2909_v3, %v2917_v16  ;;  %v2861_v14 = vpop.trf.xlu0 }
 0x90f   : > { %v2925_v6 = vadd.f32 %v2921_v59, %v4245_v52  ;;  %v2908_v53 = vrot.slane %v2861_v14, %v4228_v39 }
 0x910   : > { %v2932_v15 = vsel %vm801_vm6, %v2926_v26, -inf }
 0x911   : > { %2933 = vmax.xlane.f32.xlu0 %v2932_v15  ;;  %v2929_v42 = vsel %vm801_vm6, %v2925_v6, -inf  ;;  %v2912_v38 = vadd.f32 %v2908_v53, %v2891_v62  ;;  %v3396_v62 = vld [vmem:[%s4741_s7] ss:$0 sm:$0xff] }
 0x912   : > { %2930 = vmax.xlane.f32.xlu1 %v2929_v42  ;;  %v2829_v46 = vpop.trf.xlu0 }
 0x913   : > { %v2904_v10 = vrot.slane %v2829_v46, %v4228_v39  ;;  %v2920_v50 = vmul.f32 0.2, %v2912_v38  ;;  %vm2916_vm0 = vcmp.ge.f32.partialorder %v2912_v38, 0.0 }
 0x915   : > { %v2911_v51 = vadd.f32 %v2904_v10, %v2887_v44  ;;  %v2924_v60 = vsel %vm2916_vm0, %v2912_v38, %v2920_v50 }
 0x916   : > { %v2928_v55 = vadd.f32 %v2924_v60, %v4245_v52 }
 0x917   : > { %v2919_v49 = vmul.f32 0.2, %v2911_v51  ;;  %vm2915_vm1 = vcmp.ge.f32.partialorder %v2911_v51, 0.0 }
 0x918   : > { %v2938_v56 = vsel %vm801_vm6, %v2928_v55, -inf }
 0x919   : > { %v2923_v25 = vsel %vm2915_vm1, %v2911_v51, %v2919_v49 }
 0x91a   : > { %v2927_v28 = vadd.f32 %v2923_v25, %v4245_v52 }
 0x91c   : > { %v2935_v54 = vsel %vm801_vm6, %v2927_v28, -inf }
 0x91d   : > { %2936 = vmax.xlane.f32.xlu1 %v2935_v54 }
 0x921   : > { %2939 = vmax.xlane.f32.xlu1 %v2938_v56 }
 0x99e   : > { %v2934_v57 = vpop.xlane.xlu0 %2933 }
 0x99f   : > { %v2942_v31 = vsub.f32 %v2926_v26, %v2934_v57  ;;  %v2931_v39 = vpop.xlane.xlu1 %2930 }
 0x9a0   : > { %v2941_v30 = vsub.f32 %v2925_v6, %v2931_v39 }
 0x9a1   : > { %v2947_v27 = vmul.f32 1.442695, %v2942_v31 }
 0x9a2   : > { %v2945_v58 = vmul.f32 1.442695, %v2941_v30 }
 0x9a3   : > { %3874 = vpow2.f32 %v2947_v27 }
 0x9a4   : > { %3876 = vpow2.f32 %v2945_v58 }
 0x9aa   : > { %v2937_v24 = vpop.xlane.xlu1 %2936 }
 0x9ab   : > { %v2943_v0 = vsub.f32 %v2927_v28, %v2937_v24 }
 0x9ad   : > { %v3875_v7 = vpop.eup %3874  ;;  %v2949_v9 = vmul.f32 1.442695, %v2943_v0 }
 0x9ae   : > { %v3877_v2 = vpop.eup %3876  ;;  %v2956_v45 = vsel %vm801_vm6, %v3875_v7, 0.0  ;;  %v2940_v52 = vpop.xlane.xlu1 %2939 }
 0x9af   : > { %2957 = vadd.xlane.f32.xlu1 %v2956_v45  ;;  %v2953_v37 = vsel %vm801_vm6, %v3877_v2, 0.0  ;;  %3878 = vpow2.f32 %v2949_v9  ;;  %v2944_v18 = vsub.f32 %v2928_v55, %v2940_v52 }
 0x9b0   : > { %2954 = vadd.xlane.f32.xlu0 %v2953_v37 }
 0x9b1   : > { %v2951_v17 = vmul.f32 1.442695, %v2944_v18 }
 0x9b3   : > { %3880 = vpow2.f32 %v2951_v17 }
 0x9b9   : > { %v3879_v36 = vpop.eup %3878 }
 0x9ba   : > { %v2959_v21 = vsel %vm801_vm6, %v3879_v36, 0.0 }
 0x9bb   : > { %2960 = vadd.xlane.f32.xlu0 %v2959_v21 }
 0x9bd   : > { %v3881_v41 = vpop.eup %3880 }
 0x9be   : > { %v2962_v23 = vsel %vm801_vm6, %v3881_v41, 0.0 }
 0x9bf   : > { %2963 = vadd.xlane.f32.xlu1 %v2962_v23 }
 0xa3c   : > { %v2958_v4 = vpop.xlane.xlu1 %2957 }
 0xa3d   : > { %v2955_v12 = vpop.xlane.xlu0 %2954 }
 0xa3e   : > { %3882 = vrcp.f32 %v2955_v12 }
 0xa3f   : > { %3884 = vrcp.f32 %v2958_v4 }
 0xa48   : > { %v3883_v1 = vpop.eup %3882  ;;  %v2961_v32 = vpop.xlane.xlu0 %2960 }
 0xa49   : > { %v2969_v8 = vmul.f32 %v3883_v1, %v3877_v2  ;;  %v3885_v35 = vpop.eup %3884  ;;  %3886 = vrcp.f32 %v2961_v32 }
 0xa4a   : > { %v2970_v29 = vmul.f32 %v3885_v35, %v3875_v7 }
 0xa4b   : > { %3643 = vmatmul.mubr.msk.f32.vlgmr.msra.gmra.mrb[22].mxu1 %vm801_vm6, %v2969_v8 }
 0xa4c   : > { %3646 = vmatpush3.msra.mxu1 %v4637_v63  ;;  %3647 = vmatprep.mubr.msk.f32.mxu1 %vm3978_vm8, %v3969_v22  ;;  %v2964_v33 = vpop.xlane.xlu1 %2963 }
 0xa4d   : > { %3655 = vmatprep.subr.mxu1 %v3969_v22  ;;  %3888 = vrcp.f32 %v2964_v33 }
 0xa4f   : > { %3648 = vmatmul.mubr.msk.f32.vlgmr.msra.gmra.mrb[24].mxu1 %vm801_vm6, %v2970_v29 }
 0xa50   : > { %3656 = vmatpush3.msra.mxu1 %v4643_v20  ;;  %3657 = vmatprep.mubr.msk.f32.mxu1 %vm3978_vm8, %v3969_v22 }
 0xa53   : > { %v3887_v43 = vpop.eup %3886 }
 0xa54   : > { %v2971_v5 = vmul.f32 %v3887_v43, %v3879_v36 }
 0xa56   : > { %3653 = vmatmul.mubr.msk.f32.vlgmr.msra.gmra.mrb[26].mxu0 %vm801_vm6, %v2971_v5 }
 0xa57   : > { %v3889_v63 = vpop.eup %3888 }
 0xa58   : > { %v2972_v34 = vmul.f32 %v3889_v63, %v3881_v41 }
 0xa5a   : > { %3658 = vmatmul.mubr.msk.f32.vlgmr.msra.gmra.mrb[26].mxu1 %vm801_vm6, %v2972_v34 }
 0xb1e   : > { %v3048_v44 = vpop.f32.mrb[22].mxu1 }
 0xb1f   : > { %v3049_v20 = vadd.f32 %v3396_v62, %v3048_v44  ;;  %v3644_v11 = vpop.f32.mrb[23].mxu1 }
 0xb21   : > { %3271 = vst.msk [vmem:[%s278_s22] sm:$0xff] %vm320_vm2, %v3049_v20 }
 0xb22   : > { %v3121_v22 = vpop.f32.mrb[24].mxu1 }
 0xb23   : > { %v3122_v47 = vadd.f32 %v3396_v62, %v3121_v22  ;;  %v3649_v13 = vpop.f32.mrb[25].mxu1 }
 0xb25   : > { %3272 = vst.msk [vmem:[%s278_s22 + $0x8] sm:$0xff] %vm320_vm2, %v3122_v47 }
 0xb29   : > { %v3194_v40 = vpop.f32.mrb[26].mxu0 }
 0xb2a   : > { %v3195_v48 = vadd.f32 %v3396_v62, %v3194_v40  ;;  %v3654_v3 = vpop.f32.mrb[27].mxu0 }
 0xb2c   : > { %3273 = vst.msk [vmem:[%s278_s22 + $0x10] sm:$0xff] %vm320_vm2, %v3195_v48 }
 0xb2d   : > { %v3267_v61 = vpop.f32.mrb[26].mxu1 }
 0xb2e   : > { %v3268_v16 = vadd.f32 %v3396_v62, %v3267_v61  ;;  %v3659_v19 = vpop.f32.mrb[27].mxu1 }
 0xb30   : > { %3274 = vst.msk [vmem:[%s278_s22 + $0x18] sm:$0xff] %vm320_vm2, %v3268_v16 }
 0xb31   : > { %3915 = shalt.err (!%p3912_p8)
}
 0xb32   : > { %s3916_s14 = scalar_lea.hbm %s4690_s27, 512  ;;  %s3920_s17 = scalar_lea.hbm %s4742_s8, 1024 }
 0xb33   : > { %p3917_p9 = scmp.ne.s32.totalorder %s4690_s27, %s3916_s14  ;;  %p3921_p0 = scmp.lt.u32.totalorder %s4690_s27, %s4742_s8 }
 0xb34   : > { %p3922_p1 = scmp.lt.u32.totalorder %s3920_s17, %s3916_s14  ;;  %p3924_p3 = scmp.lt.u32.totalorder %s3916_s14, %s4690_s27 }
 0xb35   : > { %p3918_p12 = pnand %p3917_p9, %p4073_p10 }
 0xb36   : > { %p3923_p2 = por %p3922_p1, %p3921_p0 }
 0xb37   : > { %p3919_p13 = pneg %p3918_p12 }
 0xb38   : > { %p3925_p4 = por %p3924_p3, %p3923_p2 }
 0xb3a   : > { %p3926_p5 = pnand %p3925_p4, %p3919_p13 }
 0xb3c   : > { %3929 = shalt.err (!%p3926_p5)
}
 0xb3d   : > { %s3985_s25 = smov 128   ;;  %s3986_s26 = smov 8  }
 0xb3e   : > { %3710 = dma.vmem_to_hbm [thread:$0]  (%p4073_p10), %s4685_s23, 512, %s4690_s27, %s4693_s28, %s3985_s25, %s3985_s25, %s3986_s26  }
 0xb3f PF: > { %p3716_p6 = scmp.ge.s32.totalorder %s3966_s12, 2  ;;  %s3304_s13 = sand.u32 1, %s3954_s10  }
 0xb40   : > { %s3305_s29 = scalar_lea.sflag [#allocation5], %s3304_s13 }
 0xb41   : > { %p3713_p7 = pnand %p3716_p6, %p4077_p11 }
 0xb43   : > { %3949 = dma.done.wait (!%p3713_p7), %s3305_s29, 512  }
 0xb44   : > { %3951 = vsyncadd (!%p3713_p7), %s3305_s29, 4294966784  ;;  %p24_p8 = scmp.ge.s32.totalorder %s4060_s15, 4   ;;  %s4747_s10 = smov %s3958_s11 }
 0xb45   : > { %s4748_s11 = smov %s3962_s0  ;;  %s4749_s0 = smov %s4071_s18 }
 0xb46   : > { %s4750_s12 = smov %s4060_s15  ;;  %26 = sbr.rel (!%p24_p8) target bundleno = 18 (0x12), region = 83 }
 0xb4d   :  { %3310 = vsyncpa [#allocation5], 1 }
 0xb4e   :  { %3312 = vsyncpa [#allocation5 + $0x1], 1 }

</bundles_post_ra>
